<compile_context>
chip_gen: v5e
topology: v5e:2x2
jax: 0.10.0
libtpu: 0.0.40
codegen_flags: <defaults>
</compile_context>

<pallas_src>
import functools
import math

import jax
import jax.numpy as jnp
from jax.experimental import pallas as pl
from jax.experimental.pallas import tpu as pltpu

LANE = 128                       # TPU lane width
VMEM_LIMIT = 48 * 1024 * 1024    # safe on v5e/v6e (128 MiB) and v7x (64 MiB)


# ---------------------------------------------------------------------------
# Helpers
# ---------------------------------------------------------------------------
def _round_up(x, m):
    return (x + m - 1) // m * m


def _pad_to_multiple(a, axis, mult):
    pad = (-a.shape[axis]) % mult
    if pad == 0:
        return a
    widths = [(0, 0)] * a.ndim
    widths[axis] = (0, pad)
    return jnp.pad(a, widths)


def _pick_tile(n, pref):
    """Largest multiple of 128 that divides n and is <= pref (n % 128 == 0)."""
    best = LANE
    cand = LANE
    limit = min(pref, n)
    while cand <= limit:
        if n % cand == 0:
            best = cand
        cand += LANE
    return best


# ---------------------------------------------------------------------------
# Kernels
# ---------------------------------------------------------------------------
def _linear_kernel(x_ref, w_ref, b_ref, o_ref, *, relu):
    # y = x @ W + b  (optional ReLU); f32 MXU, lane-dense output store.
    y = jnp.dot(x_ref[...], w_ref[...], preferred_element_type=jnp.float32)
    y = y + b_ref[...]
    if relu:
        y = jnp.maximum(y, 0.0)
    o_ref[...] = y.astype(o_ref.dtype)


def _gnn_res_layer_kernel(a_ref, xs_ref, xi_ref, dsc_ref,
                          wr_ref, br_ref, w1_ref, b1_ref, w2_ref, b2_ref,
                          o_ref, acc_ref, res_ref):
    """Fused GNN_res hidden layer.

    grid = (N // TM, N // TK); axis 0 'parallel' (rows), axis 1 'arbitrary' (K).
    a_ref    : (TM, TK) int8 binary adjacency block (self-loops included)
    xs_ref   : (TK, H)  bf16, X pre-scaled by d^-1/2 (aggregation operand)
    xi_ref   : (TM, H)  bf16, un-scaled X rows (residual operand)
    dsc_ref  : (TM, 1)  f32, d^-1/2 row scale applied in the epilogue
    acc_ref  : (TM, H)  f32 scratch, aggregation accumulator
    res_ref  : (TM, H)  f32 scratch, residual branch (computed at k == 0)
    """
    k = pl.program_id(1)

    @pl.when(k == 0)
    def _init():
        acc_ref[...] = jnp.zeros_like(acc_ref)
        # Residual branch overlaps with the adjacency stream instead of sitting
        # in the last-k serial tail.
        res_ref[...] = jnp.dot(xi_ref[...], wr_ref[...],
                               preferred_element_type=jnp.float32) + br_ref[...]

    # Streamed aggregation partial sum: int8 0/1 block upcast to bf16 on the VPU
    # (exact), bf16 x bf16 MXU matmul, f32 accumulation.
    acc_ref[...] += jnp.dot(a_ref[...].astype(jnp.bfloat16), xs_ref[...],
                            preferred_element_type=jnp.float32)

    @pl.when(k == pl.num_programs(1) - 1)
    def _epilogue():
        # Apply the factored-out D^-1/2 row normalization.
        agg = (acc_ref[...] * dsc_ref[...]).astype(jnp.bfloat16)
        # lin1 + ReLU (dropout1: identity at inference)
        h = jnp.dot(agg, w1_ref[...],
                    preferred_element_type=jnp.float32) + b1_ref[...]
        h = jnp.maximum(h, 0.0).astype(jnp.bfloat16)
        # lin2
        h = jnp.dot(h, w2_ref[...],
                    preferred_element_type=jnp.float32) + b2_ref[...]
        # residual add + ReLU (dropout2: identity at inference)
        o_ref[...] = jnp.maximum(res_ref[...] + h, 0.0).astype(o_ref.dtype)


# ---------------------------------------------------------------------------
# Wrappers
# ---------------------------------------------------------------------------
def pallas_linear(x, w, b, *, relu=False, pref_tm=256):
    n, _ = x.shape
    f_out = w.shape[1]

    # zero-pad rows / feature dims (exact: padded W rows/cols and b cols are zero)
    xp = _pad_to_multiple(_pad_to_multiple(x, 0, LANE), 1, LANE)
    wp = _pad_to_multiple(_pad_to_multiple(w, 0, LANE), 1, LANE)
    bp = _pad_to_multiple(b, 1, LANE)
    np_ = xp.shape[0]
    f_in_p, f_out_p = wp.shape

    tm = _pick_tile(np_, min(pref_tm, max(LANE, np_ // 2)))

    cost = pl.CostEstimate(
        flops=2 * np_ * f_in_p * f_out_p,
        transcendentals=0,
        bytes_accessed=4 * (np_ * f_in_p + f_in_p * f_out_p + f_out_p
                            + np_ * f_out_p),
    )
    out = pl.pallas_call(
        functools.partial(_linear_kernel, relu=relu),
        out_shape=jax.ShapeDtypeStruct((np_, f_out_p), jnp.float32),
        grid_spec=pltpu.PrefetchScalarGridSpec(
            num_scalar_prefetch=0,
            grid=(np_ // tm,),
            in_specs=[
                pl.BlockSpec((tm, f_in_p), lambda i: (i, 0)),
                pl.BlockSpec((f_in_p, f_out_p), lambda i: (0, 0)),
                pl.BlockSpec((1, f_out_p), lambda i: (0, 0)),
            ],
            out_specs=pl.BlockSpec((tm, f_out_p), lambda i: (i, 0)),
        ),
        compiler_params=pltpu.CompilerParams(
            dimension_semantics=("parallel",),
            vmem_limit_bytes=VMEM_LIMIT,
        ),
        cost_estimate=cost,
    )(xp, wp, bp)
    return out[:n, :f_out]


def pallas_gnn_res_layer(h, adj_i8, dsc, wr, br, w1, b1, w2, b2, *, tm, tk):
    n, hid = h.shape
    assert hid % LANE == 0, "hidden size must be a multiple of 128"
    assert n % tm == 0 and n % tk == 0, "padded N must be divisible by the tiles"

    # Pre-scale by D^-1/2 (column normalization) + bf16 cast: one cheap O(N*H)
    # elementwise op that halves the re-read xs stream and feeds the MXU bf16.
    xs = (h * dsc).astype(jnp.bfloat16)
    xi = h.astype(jnp.bfloat16)
    wr_b = wr.astype(jnp.bfloat16)
    w1_b = w1.astype(jnp.bfloat16)
    w2_b = w2.astype(jnp.bfloat16)

    cost = pl.CostEstimate(
        flops=2 * n * n * hid + 3 * 2 * n * hid * hid,
        transcendentals=0,
        bytes_accessed=(n * n                        # int8 A, streamed once
                        + (n // tm) * n * hid * 2    # xs re-read per row tile (bf16)
                        + n * hid * 2                # xi (bf16)
                        + n * 4                      # dsc
                        + 3 * hid * hid * 2          # bf16 weights
                        + 3 * hid * 4                # f32 biases
                        + n * hid * 4),              # output
    )
    return pl.pallas_call(
        _gnn_res_layer_kernel,
        out_shape=jax.ShapeDtypeStruct((n, hid), jnp.float32),
        grid_spec=pltpu.PrefetchScalarGridSpec(
            num_scalar_prefetch=0,
            grid=(n // tm, n // tk),
            in_specs=[
                pl.BlockSpec((tm, tk), lambda i, k: (i, k)),     # A block (int8)
                pl.BlockSpec((tk, hid), lambda i, k: (k, 0)),    # xs (bf16)
                pl.BlockSpec((tm, hid), lambda i, k: (i, 0)),    # xi (bf16)
                pl.BlockSpec((tm, 1), lambda i, k: (i, 0)),      # dsc rows
                pl.BlockSpec((hid, hid), lambda i, k: (0, 0)),   # Wr (bf16)
                pl.BlockSpec((1, hid), lambda i, k: (0, 0)),     # br
                pl.BlockSpec((hid, hid), lambda i, k: (0, 0)),   # W1 (bf16)
                pl.BlockSpec((1, hid), lambda i, k: (0, 0)),     # b1
                pl.BlockSpec((hid, hid), lambda i, k: (0, 0)),   # W2 (bf16)
                pl.BlockSpec((1, hid), lambda i, k: (0, 0)),     # b2
            ],
            out_specs=pl.BlockSpec((tm, hid), lambda i, k: (i, 0)),
            scratch_shapes=[pltpu.VMEM((tm, hid), jnp.float32),   # aggregation acc
                            pltpu.VMEM((tm, hid), jnp.float32)],  # residual branch
        ),
        compiler_params=pltpu.CompilerParams(
            dimension_semantics=("parallel", "arbitrary"),
            vmem_limit_bytes=VMEM_LIMIT,
        ),
        cost_estimate=cost,
    )(adj_i8, xs, xi, dsc, wr_b, br, w1_b, b1, w2_b, b2)


# ---------------------------------------------------------------------------
# Model: parameter init + forward
# ---------------------------------------------------------------------------
def xavier_uniform(key, fan_in, fan_out):
    bound = math.sqrt(6.0 / (fan_in + fan_out))
    return jax.random.uniform(key, (fan_in, fan_out), jnp.float32, -bound, bound)


def linear_bias(key, fan_in, fan_out):
    bound = 1.0 / math.sqrt(fan_in)
    return jax.random.uniform(key, (1, fan_out), jnp.float32, -bound, bound)


def init_gnn_res_params(key, in_size, hid_size, num_layers, out_size):
    keys = list(jax.random.split(key, 4 + 6 * num_layers))
    ki = iter(keys)
    params = {
        "lin_in_w": xavier_uniform(next(ki), in_size, hid_size),
        "lin_in_b": linear_bias(next(ki), in_size, hid_size),
        "lin_out_w": xavier_uniform(next(ki), hid_size, out_size),
        "lin_out_b": linear_bias(next(ki), hid_size, out_size),
        "res_w": [], "res_b": [],
        "lin1_w": [], "lin1_b": [],
        "lin2_w": [], "lin2_b": [],
    }
    for _ in range(num_layers):
        params["res_w"].append(xavier_uniform(next(ki), hid_size, hid_size))
        params["res_b"].append(linear_bias(next(ki), hid_size, hid_size))
        params["lin1_w"].append(xavier_uniform(next(ki), hid_size, hid_size))
        params["lin1_b"].append(linear_bias(next(ki), hid_size, hid_size))
        params["lin2_w"].append(xavier_uniform(next(ki), hid_size, hid_size))
        params["lin2_b"].append(linear_bias(next(ki), hid_size, hid_size))
    return params


def gnn_res_forward(params, adj_i8, dsc, x, *, num_layers,
                    pref_tm=512, pref_tk=1024):
    """adj_i8: (N, N) int8 0/1 adjacency (self-loops included); dsc: (N, 1) d^-1/2."""
    n = x.shape[0]

    # Exact zero-padding of the node axis so it divides the tiles.
    xp = _pad_to_multiple(x, 0, LANE)
    adj_p = _pad_to_multiple(_pad_to_multiple(adj_i8, 0, LANE), 1, LANE)
    dsc_p = _pad_to_multiple(dsc, 0, LANE)
    np_ = xp.shape[0]

    # Row tile kept <= N/2 when possible so the "parallel" axis load-balances
    # across v7x's two TensorCores; reduction tile as large as divides N.
    tm = _pick_tile(np_, min(pref_tm, max(LANE, np_ // 2)))
    tk = _pick_tile(np_, pref_tk)

    # x = lin_in(x).relu()
    h = pallas_linear(xp, params["lin_in_w"], params["lin_in_b"], relu=True)
    # fused hidden layers
    for i in range(num_layers):
        h = pallas_gnn_res_layer(
            h, adj_p, dsc_p,
            params["res_w"][i], params["res_b"][i],
            params["lin1_w"][i], params["lin1_b"][i],
            params["lin2_w"][i], params["lin2_b"][i],
            tm=tm, tk=tk,
        )
    # x = lin_out(x)
    out = pallas_linear(h, params["lin_out_w"], params["lin_out_b"], relu=False)
    return out[:n]


# ---------------------------------------------------------------------------
# Pure-JAX reference (mirrors the kernel's dtype scheme: int8->bf16 adjacency,
# factored D^-1/2 normalization, bf16 operands with f32 accumulation)
# ---------------------------------------------------------------------------
def gnn_res_reference(params, adj_i8, dsc, x, *, num_layers):
    a_bf = adj_i8.astype(jnp.bfloat16)
    h = jnp.maximum(x @ params["lin_in_w"] + params["lin_in_b"], 0.0)
    for i in range(num_layers):
        x_res = jnp.dot(h.astype(jnp.bfloat16),
                        params["res_w"][i].astype(jnp.bfloat16),
                        preferred_element_type=jnp.float32) + params["res_b"][i]
        xs = (h * dsc).astype(jnp.bfloat16)
        agg = jnp.dot(a_bf, xs, preferred_element_type=jnp.float32) * dsc
        t = jnp.dot(agg.astype(jnp.bfloat16),
                    params["lin1_w"][i].astype(jnp.bfloat16),
                    preferred_element_type=jnp.float32) + params["lin1_b"][i]
        t = jnp.maximum(t, 0.0)
        t = jnp.dot(t.astype(jnp.bfloat16),
                    params["lin2_w"][i].astype(jnp.bfloat16),
                    preferred_element_type=jnp.float32) + params["lin2_b"][i]
        h = jnp.maximum(x_res + t, 0.0)
    return h @ params["lin_out_w"] + params["lin_out_b"]


# ---------------------------------------------------------------------------
# Main
# ---------------------------------------------------------------------------
if __name__ == "__main__":
    N = 256            # number of graph nodes
    IN_SIZE = 64       # padded to 128 lanes inside pallas_linear
    HID_SIZE = 128     # lane-dense hidden width
    OUT_SIZE = 16      # padded to 128 lanes, sliced back after the kernel
    NUM_LAYERS = 2

    root = jax.random.PRNGKey(0)
    k_feat, k_graph, k_params = jax.random.split(root, 3)

    # node features
    x = jax.random.normal(k_feat, (N, IN_SIZE), jnp.float32)

    # synthetic undirected graph with self-loops
    rand = jax.random.uniform(k_graph, (N, N))
    adj = (rand < 0.05).astype(jnp.float32)
    adj = jnp.maximum(adj, adj.T)                            # symmetrize
    adj = jnp.maximum(adj, jnp.eye(N, dtype=jnp.float32))    # self-loops (no 0-deg)
    deg = jnp.sum(adj, axis=1)
    dsc = (deg ** -0.5)[:, None]                             # D^-1/2, (N, 1) f32
    adj_i8 = adj.astype(jnp.int8)                            # binary A, int8 stream

    params = init_gnn_res_params(k_params, IN_SIZE, HID_SIZE, NUM_LAYERS, OUT_SIZE)

    fwd = jax.jit(functools.partial(gnn_res_forward, num_layers=NUM_LAYERS))
    out = jax.block_until_ready(fwd(params, adj_i8, dsc, x))

    ref = gnn_res_reference(params, adj_i8, dsc, x, num_layers=NUM_LAYERS)
    assert out.shape == (N, OUT_SIZE)
    max_err = float(jnp.max(jnp.abs(out - ref)))
    assert jnp.allclose(out, ref, atol=2e-2, rtol=2e-2), \
        f"mismatch vs reference: {max_err}"

    print("KERNEL_OK")
</pallas_src>

<mosaic_0001>
module attributes {stable_mosaic.version = 11 : i64} {
  func.func @_linear_kernel(%arg0: i32, %arg1: memref<128x128xf32, #tpu.memory_space<vmem>>, %arg2: memref<128x128xf32, #tpu.memory_space<vmem>>, %arg3: memref<1x128xf32, #tpu.memory_space<vmem>>, %arg4: memref<128x128xf32, #tpu.memory_space<vmem>>) attributes {dimension_semantics = [#tpu.dimension_semantics<parallel>], iteration_bounds = array<i64: 2>, scalar_prefetch = 0 : i64, scratch_operands = 0 : i64, tpu.core_type = #tpu.core_type<tc>, window_params = [{transform_indices = @transform_0, window_bounds = array<i64: 128, 128>}, {pipeline_mode = #tpu.pipeline_mode<synchronous>, transform_indices = @transform_1, window_bounds = array<i64: 128, 128>}, {pipeline_mode = #tpu.pipeline_mode<synchronous>, transform_indices = @transform_2, window_bounds = array<i64: 1, 128>}, {transform_indices = @transform_3, window_bounds = array<i64: 128, 128>}]} {
    %c0 = arith.constant 0 : index
    %c0_0 = arith.constant 0 : index
    %0 = vector.load %arg1[%c0, %c0_0] : memref<128x128xf32, #tpu.memory_space<vmem>>, vector<128x128xf32>
    %c0_1 = arith.constant 0 : index
    %c0_2 = arith.constant 0 : index
    %1 = vector.load %arg2[%c0_1, %c0_2] : memref<128x128xf32, #tpu.memory_space<vmem>>, vector<128x128xf32>
    %cst = arith.constant dense<0.000000e+00> : vector<128x128xf32>
    %2 = tpu.matmul %0, %1, %cst {dimension_numbers = #tpu.dot_dimension_numbers<[1], [0], [0], [1], [0, 0, 1, 1], [], []>} : vector<128x128xf32>, vector<128x128xf32>, vector<128x128xf32> -> vector<128x128xf32>
    %c0_3 = arith.constant 0 : index
    %c0_4 = arith.constant 0 : index
    %3 = vector.load %arg3[%c0_3, %c0_4] : memref<1x128xf32, #tpu.memory_space<vmem>>, vector<1x128xf32>
    %4 = vector.broadcast %3 : vector<1x128xf32> to vector<128x128xf32>
    %5 = arith.addf %2, %4 : vector<128x128xf32>
    %cst_5 = arith.constant 0.000000e+00 : f32
    %6 = vector.broadcast %cst_5 : f32 to vector<128x128xf32>
    %7 = arith.maximumf %5, %6 : vector<128x128xf32>
    %c0_6 = arith.constant 0 : index
    %c0_7 = arith.constant 0 : index
    %8 = vector.load %arg4[%c0_6, %c0_7] : memref<128x128xf32, #tpu.memory_space<vmem>>, vector<128x128xf32>
    tpu.vector_store %arg4[%c0_6, %c0_7], %7 {strides = array<i32>} : memref<128x128xf32, #tpu.memory_space<vmem>>, vector<128x128xf32>,
    return
  }
  func.func @transform_0(%arg0: i32) -> (i32, i32) {
    %c0_i32 = arith.constant 0 : i32
    %c0_i32_0 = arith.constant 0 : i32
    return %arg0, %c0_i32 : i32, i32
  }
  func.func @transform_1(%arg0: i32) -> (i32, i32) {
    %c0_i32 = arith.constant 0 : i32
    %c0_i32_0 = arith.constant 0 : i32
    %c0_i32_1 = arith.constant 0 : i32
    return %c0_i32, %c0_i32_0 : i32, i32
  }
  func.func @transform_2(%arg0: i32) -> (i32, i32) {
    %c0_i32 = arith.constant 0 : i32
    %c0_i32_0 = arith.constant 0 : i32
    %c0_i32_1 = arith.constant 0 : i32
    return %c0_i32, %c0_i32_0 : i32, i32
  }
  func.func @transform_3(%arg0: i32) -> (i32, i32) {
    %c0_i32 = arith.constant 0 : i32
    %c0_i32_0 = arith.constant 0 : i32
    return %arg0, %c0_i32 : i32, i32
  }
}

module attributes {stable_mosaic.version = 11 : i64} {
  func.func @_gnn_res_layer_kernel(%arg0: i32, %arg1: i32, %arg2: memref<128x256xi8, #tpu.memory_space<vmem>>, %arg3: memref<256x128xbf16, #tpu.memory_space<vmem>>, %arg4: memref<128x128xbf16, #tpu.memory_space<vmem>>, %arg5: memref<128x1xf32, #tpu.memory_space<vmem>>, %arg6: memref<128x128xbf16, #tpu.memory_space<vmem>>, %arg7: memref<1x128xf32, #tpu.memory_space<vmem>>, %arg8: memref<128x128xbf16, #tpu.memory_space<vmem>>, %arg9: memref<1x128xf32, #tpu.memory_space<vmem>>, %arg10: memref<128x128xbf16, #tpu.memory_space<vmem>>, %arg11: memref<1x128xf32, #tpu.memory_space<vmem>>, %arg12: memref<128x128xf32, #tpu.memory_space<vmem>>, %arg13: memref<128x128xf32, #tpu.memory_space<vmem>>, %arg14: memref<128x128xf32, #tpu.memory_space<vmem>>) attributes {dimension_semantics = [#tpu.dimension_semantics<parallel>, #tpu.dimension_semantics<arbitrary>], iteration_bounds = array<i64: 2, 1>, scalar_prefetch = 0 : i64, scratch_operands = 2 : i64, tpu.core_type = #tpu.core_type<tc>, window_params = [{transform_indices = @transform_0, window_bounds = array<i64: 128, 256>}, {transform_indices = @transform_1, window_bounds = array<i64: 256, 128>}, {transform_indices = @transform_2, window_bounds = array<i64: 128, 128>}, {transform_indices = @transform_3, window_bounds = array<i64: 128, 1>}, {pipeline_mode = #tpu.pipeline_mode<synchronous>, transform_indices = @transform_4, window_bounds = array<i64: 128, 128>}, {pipeline_mode = #tpu.pipeline_mode<synchronous>, transform_indices = @transform_5, window_bounds = array<i64: 1, 128>}, {pipeline_mode = #tpu.pipeline_mode<synchronous>, transform_indices = @transform_6, window_bounds = array<i64: 128, 128>}, {pipeline_mode = #tpu.pipeline_mode<synchronous>, transform_indices = @transform_7, window_bounds = array<i64: 1, 128>}, {pipeline_mode = #tpu.pipeline_mode<synchronous>, transform_indices = @transform_8, window_bounds = array<i64: 128, 128>}, {pipeline_mode = #tpu.pipeline_mode<synchronous>, transform_indices = @transform_9, window_bounds = array<i64: 1, 128>}, {transform_indices = @transform_10, window_bounds = array<i64: 128, 128>}]} {
    %c0_i32 = arith.constant 0 : i32
    %0 = arith.cmpi eq, %arg1, %c0_i32 : i32
    %1 = arith.extui %0 : i1 to i32
    %c0_i32_0 = arith.constant 0 : i32
    %2 = arith.cmpi ne, %1, %c0_i32_0 : i32
    scf.if %2 {
      %cst_10 = arith.constant 0.000000e+00 : f32
      %13 = vector.broadcast %cst_10 : f32 to vector<128x128xf32>
      %c0_11 = arith.constant 0 : index
      %c0_12 = arith.constant 0 : index
      %14 = vector.load %arg13[%c0_11, %c0_12] : memref<128x128xf32, #tpu.memory_space<vmem>>, vector<128x128xf32>
      tpu.vector_store %arg13[%c0_11, %c0_12], %13 {strides = array<i32>} : memref<128x128xf32, #tpu.memory_space<vmem>>, vector<128x128xf32>,
      %c0_13 = arith.constant 0 : index
      %c0_14 = arith.constant 0 : index
      %15 = vector.load %arg4[%c0_13, %c0_14] : memref<128x128xbf16, #tpu.memory_space<vmem>>, vector<128x128xbf16>
      %c0_15 = arith.constant 0 : index
      %c0_16 = arith.constant 0 : index
      %16 = vector.load %arg6[%c0_15, %c0_16] : memref<128x128xbf16, #tpu.memory_space<vmem>>, vector<128x128xbf16>
      %cst_17 = arith.constant dense<0.000000e+00> : vector<128x128xf32>
      %17 = tpu.matmul %15, %16, %cst_17 {dimension_numbers = #tpu.dot_dimension_numbers<[1], [0], [0], [1], [0, 0, 1, 1], [], []>} : vector<128x128xbf16>, vector<128x128xbf16>, vector<128x128xf32> -> vector<128x128xf32>
      %c0_18 = arith.constant 0 : index
      %c0_19 = arith.constant 0 : index
      %18 = vector.load %arg7[%c0_18, %c0_19] : memref<1x128xf32, #tpu.memory_space<vmem>>, vector<1x128xf32>
      %19 = vector.broadcast %18 : vector<1x128xf32> to vector<128x128xf32>
      %20 = arith.addf %17, %19 : vector<128x128xf32>
      %c0_20 = arith.constant 0 : index
      %c0_21 = arith.constant 0 : index
      %21 = vector.load %arg14[%c0_20, %c0_21] : memref<128x128xf32, #tpu.memory_space<vmem>>, vector<128x128xf32>
      tpu.vector_store %arg14[%c0_20, %c0_21], %20 {strides = array<i32>} : memref<128x128xf32, #tpu.memory_space<vmem>>, vector<128x128xf32>,
    } else {
    }
    %c0 = arith.constant 0 : index
    %c0_1 = arith.constant 0 : index
    %3 = vector.load %arg13[%c0, %c0_1] : memref<128x128xf32, #tpu.memory_space<vmem>>, vector<128x128xf32>
    %c0_2 = arith.constant 0 : index
    %c0_3 = arith.constant 0 : index
    %4 = vector.load %arg2[%c0_2, %c0_3] : memref<128x256xi8, #tpu.memory_space<vmem>>, vector<128x256xi8>
    %5 = arith.sitofp %4 : vector<128x256xi8> to vector<128x256xbf16>
    %c0_4 = arith.constant 0 : index
    %c0_5 = arith.constant 0 : index
    %6 = vector.load %arg3[%c0_4, %c0_5] : memref<256x128xbf16, #tpu.memory_space<vmem>>, vector<256x128xbf16>
    %cst = arith.constant dense<0.000000e+00> : vector<128x128xf32>
    %7 = tpu.matmul %5, %6, %cst {dimension_numbers = #tpu.dot_dimension_numbers<[1], [0], [0], [1], [0, 0, 1, 1], [], []>} : vector<128x256xbf16>, vector<256x128xbf16>, vector<128x128xf32> -> vector<128x128xf32>
    %8 = arith.addf %3, %7 : vector<128x128xf32>
    %c0_6 = arith.constant 0 : index
    %c0_7 = arith.constant 0 : index
    %9 = vector.load %arg13[%c0_6, %c0_7] : memref<128x128xf32, #tpu.memory_space<vmem>>, vector<128x128xf32>
    tpu.vector_store %arg13[%c0_6, %c0_7], %8 {strides = array<i32>} : memref<128x128xf32, #tpu.memory_space<vmem>>, vector<128x128xf32>,
    %c0_i32_8 = arith.constant 0 : i32
    %10 = arith.cmpi eq, %arg1, %c0_i32_8 : i32
    %11 = arith.extui %10 : i1 to i32
    %c0_i32_9 = arith.constant 0 : i32
    %12 = arith.cmpi ne, %11, %c0_i32_9 : i32
    scf.if %12 {
      %c0_10 = arith.constant 0 : index
      %c0_11 = arith.constant 0 : index
      %13 = vector.load %arg13[%c0_10, %c0_11] : memref<128x128xf32, #tpu.memory_space<vmem>>, vector<128x128xf32>
      %c0_12 = arith.constant 0 : index
      %c0_13 = arith.constant 0 : index
      %14 = vector.load %arg5[%c0_12, %c0_13] : memref<128x1xf32, #tpu.memory_space<vmem>>, vector<128x1xf32>
      %15 = vector.broadcast %14 : vector<128x1xf32> to vector<128x128xf32>
      %16 = arith.mulf %13, %15 : vector<128x128xf32>
      %17 = arith.truncf %16 : vector<128x128xf32> to vector<128x128xbf16>
      %c0_14 = arith.constant 0 : index
      %c0_15 = arith.constant 0 : index
      %18 = vector.load %arg8[%c0_14, %c0_15] : memref<128x128xbf16, #tpu.memory_space<vmem>>, vector<128x128xbf16>
      %cst_16 = arith.constant dense<0.000000e+00> : vector<128x128xf32>
      %19 = tpu.matmul %17, %18, %cst_16 {dimension_numbers = #tpu.dot_dimension_numbers<[1], [0], [0], [1], [0, 0, 1, 1], [], []>} : vector<128x128xbf16>, vector<128x128xbf16>, vector<128x128xf32> -> vector<128x128xf32>
      %c0_17 = arith.constant 0 : index
      %c0_18 = arith.constant 0 : index
      %20 = vector.load %arg9[%c0_17, %c0_18] : memref<1x128xf32, #tpu.memory_space<vmem>>, vector<1x128xf32>
      %21 = vector.broadcast %20 : vector<1x128xf32> to vector<128x128xf32>
      %22 = arith.addf %19, %21 : vector<128x128xf32>
      %cst_19 = arith.constant 0.000000e+00 : f32
      %23 = vector.broadcast %cst_19 : f32 to vector<128x128xf32>
      %24 = arith.maximumf %22, %23 : vector<128x128xf32>
      %25 = arith.truncf %24 : vector<128x128xf32> to vector<128x128xbf16>
      %c0_20 = arith.constant 0 : index
      %c0_21 = arith.constant 0 : index
      %26 = vector.load %arg10[%c0_20, %c0_21] : memref<128x128xbf16, #tpu.memory_space<vmem>>, vector<128x128xbf16>
      %cst_22 = arith.constant dense<0.000000e+00> : vector<128x128xf32>
      %27 = tpu.matmul %25, %26, %cst_22 {dimension_numbers = #tpu.dot_dimension_numbers<[1], [0], [0], [1], [0, 0, 1, 1], [], []>} : vector<128x128xbf16>, vector<128x128xbf16>, vector<128x128xf32> -> vector<128x128xf32>
      %c0_23 = arith.constant 0 : index
      %c0_24 = arith.constant 0 : index
      %28 = vector.load %arg11[%c0_23, %c0_24] : memref<1x128xf32, #tpu.memory_space<vmem>>, vector<1x128xf32>
      %29 = vector.broadcast %28 : vector<1x128xf32> to vector<128x128xf32>
      %30 = arith.addf %27, %29 : vector<128x128xf32>
      %c0_25 = arith.constant 0 : index
      %c0_26 = arith.constant 0 : index
      %31 = vector.load %arg14[%c0_25, %c0_26] : memref<128x128xf32, #tpu.memory_space<vmem>>, vector<128x128xf32>
      %32 = arith.addf %31, %30 : vector<128x128xf32>
      %cst_27 = arith.constant 0.000000e+00 : f32
      %33 = vector.broadcast %cst_27 : f32 to vector<128x128xf32>
      %34 = arith.maximumf %32, %33 : vector<128x128xf32>
      %c0_28 = arith.constant 0 : index
      %c0_29 = arith.constant 0 : index
      %35 = vector.load %arg12[%c0_28, %c0_29] : memref<128x128xf32, #tpu.memory_space<vmem>>, vector<128x128xf32>
      tpu.vector_store %arg12[%c0_28, %c0_29], %34 {strides = array<i32>} : memref<128x128xf32, #tpu.memory_space<vmem>>, vector<128x128xf32>,
    } else {
    }
    return
  }
  func.func @transform_0(%arg0: i32, %arg1: i32) -> (i32, i32) {
    %c0_i32 = arith.constant 0 : i32
    return %arg0, %arg1 : i32, i32
  }
  func.func @transform_1(%arg0: i32, %arg1: i32) -> (i32, i32) {
    %c0_i32 = arith.constant 0 : i32
    %c0_i32_0 = arith.constant 0 : i32
    return %arg1, %c0_i32 : i32, i32
  }
  func.func @transform_2(%arg0: i32, %arg1: i32) -> (i32, i32) {
    %c0_i32 = arith.constant 0 : i32
    %c0_i32_0 = arith.constant 0 : i32
    return %arg0, %c0_i32 : i32, i32
  }
  func.func @transform_3(%arg0: i32, %arg1: i32) -> (i32, i32) {
    %c0_i32 = arith.constant 0 : i32
    %c0_i32_0 = arith.constant 0 : i32
    return %arg0, %c0_i32 : i32, i32
  }
  func.func @transform_4(%arg0: i32, %arg1: i32) -> (i32, i32) {
    %c0_i32 = arith.constant 0 : i32
    %c0_i32_0 = arith.constant 0 : i32
    %c0_i32_1 = arith.constant 0 : i32
    return %c0_i32, %c0_i32_0 : i32, i32
  }
  func.func @transform_5(%arg0: i32, %arg1: i32) -> (i32, i32) {
    %c0_i32 = arith.constant 0 : i32
    %c0_i32_0 = arith.constant 0 : i32
    %c0_i32_1 = arith.constant 0 : i32
    return %c0_i32, %c0_i32_0 : i32, i32
  }
  func.func @transform_6(%arg0: i32, %arg1: i32) -> (i32, i32) {
    %c0_i32 = arith.constant 0 : i32
    %c0_i32_0 = arith.constant 0 : i32
    %c0_i32_1 = arith.constant 0 : i32
    return %c0_i32, %c0_i32_0 : i32, i32
  }
  func.func @transform_7(%arg0: i32, %arg1: i32) -> (i32, i32) {
    %c0_i32 = arith.constant 0 : i32
    %c0_i32_0 = arith.constant 0 : i32
    %c0_i32_1 = arith.constant 0 : i32
    return %c0_i32, %c0_i32_0 : i32, i32
  }
  func.func @transform_8(%arg0: i32, %arg1: i32) -> (i32, i32) {
    %c0_i32 = arith.constant 0 : i32
    %c0_i32_0 = arith.constant 0 : i32
    %c0_i32_1 = arith.constant 0 : i32
    return %c0_i32, %c0_i32_0 : i32, i32
  }
  func.func @transform_9(%arg0: i32, %arg1: i32) -> (i32, i32) {
    %c0_i32 = arith.constant 0 : i32
    %c0_i32_0 = arith.constant 0 : i32
    %c0_i32_1 = arith.constant 0 : i32
    return %c0_i32, %c0_i32_0 : i32, i32
  }
  func.func @transform_10(%arg0: i32, %arg1: i32) -> (i32, i32) {
    %c0_i32 = arith.constant 0 : i32
    %c0_i32_0 = arith.constant 0 : i32
    return %arg0, %c0_i32 : i32, i32
  }
}

module attributes {stable_mosaic.version = 11 : i64} {
  func.func @_linear_kernel(%arg0: i32, %arg1: memref<128x128xf32, #tpu.memory_space<vmem>>, %arg2: memref<128x128xf32, #tpu.memory_space<vmem>>, %arg3: memref<1x128xf32, #tpu.memory_space<vmem>>, %arg4: memref<128x128xf32, #tpu.memory_space<vmem>>) attributes {dimension_semantics = [#tpu.dimension_semantics<parallel>], iteration_bounds = array<i64: 2>, scalar_prefetch = 0 : i64, scratch_operands = 0 : i64, tpu.core_type = #tpu.core_type<tc>, window_params = [{transform_indices = @transform_0, window_bounds = array<i64: 128, 128>}, {pipeline_mode = #tpu.pipeline_mode<synchronous>, transform_indices = @transform_1, window_bounds = array<i64: 128, 128>}, {pipeline_mode = #tpu.pipeline_mode<synchronous>, transform_indices = @transform_2, window_bounds = array<i64: 1, 128>}, {transform_indices = @transform_3, window_bounds = array<i64: 128, 128>}]} {
    %c0 = arith.constant 0 : index
    %c0_0 = arith.constant 0 : index
    %0 = vector.load %arg1[%c0, %c0_0] : memref<128x128xf32, #tpu.memory_space<vmem>>, vector<128x128xf32>
    %c0_1 = arith.constant 0 : index
    %c0_2 = arith.constant 0 : index
    %1 = vector.load %arg2[%c0_1, %c0_2] : memref<128x128xf32, #tpu.memory_space<vmem>>, vector<128x128xf32>
    %cst = arith.constant dense<0.000000e+00> : vector<128x128xf32>
    %2 = tpu.matmul %0, %1, %cst {dimension_numbers = #tpu.dot_dimension_numbers<[1], [0], [0], [1], [0, 0, 1, 1], [], []>} : vector<128x128xf32>, vector<128x128xf32>, vector<128x128xf32> -> vector<128x128xf32>
    %c0_3 = arith.constant 0 : index
    %c0_4 = arith.constant 0 : index
    %3 = vector.load %arg3[%c0_3, %c0_4] : memref<1x128xf32, #tpu.memory_space<vmem>>, vector<1x128xf32>
    %4 = vector.broadcast %3 : vector<1x128xf32> to vector<128x128xf32>
    %5 = arith.addf %2, %4 : vector<128x128xf32>
    %c0_5 = arith.constant 0 : index
    %c0_6 = arith.constant 0 : index
    %6 = vector.load %arg4[%c0_5, %c0_6] : memref<128x128xf32, #tpu.memory_space<vmem>>, vector<128x128xf32>
    tpu.vector_store %arg4[%c0_5, %c0_6], %5 {strides = array<i32>} : memref<128x128xf32, #tpu.memory_space<vmem>>, vector<128x128xf32>,
    return
  }
  func.func @transform_0(%arg0: i32) -> (i32, i32) {
    %c0_i32 = arith.constant 0 : i32
    %c0_i32_0 = arith.constant 0 : i32
    return %arg0, %c0_i32 : i32, i32
  }
  func.func @transform_1(%arg0: i32) -> (i32, i32) {
    %c0_i32 = arith.constant 0 : i32
    %c0_i32_0 = arith.constant 0 : i32
    %c0_i32_1 = arith.constant 0 : i32
    return %c0_i32, %c0_i32_0 : i32, i32
  }
  func.func @transform_2(%arg0: i32) -> (i32, i32) {
    %c0_i32 = arith.constant 0 : i32
    %c0_i32_0 = arith.constant 0 : i32
    %c0_i32_1 = arith.constant 0 : i32
    return %c0_i32, %c0_i32_0 : i32, i32
  }
  func.func @transform_3(%arg0: i32) -> (i32, i32) {
    %c0_i32 = arith.constant 0 : i32
    %c0_i32_0 = arith.constant 0 : i32
    return %arg0, %c0_i32 : i32, i32
  }
}

</mosaic_0001>

<bundles_post_ra>
// kernel: gnn_res_forward.4
= control target key start
LH: loop header
LB: loop body
LE: loop exit
PB: predicated region body
PF: predicated region fallthrough
CT: control target
= control target key end

     0   :  { %s459_s12 = smov 0   ;;  %s572_s0 = inlined_call_operand.vmem [shape: f32[256,128], index: 0, kind: input, shape index: {}]   ;;  %s573_s1 = inlined_call_operand.vmem [shape: f32[128,128], index: 1, kind: input, shape index: {}]   ;;  %s574_s2 = inlined_call_operand.vmem [shape: f32[1,128], index: 2, kind: input, shape index: {}]   ;;  %s575_s3 = inlined_call_operand.vmem [shape: f32[256,128], index: 3, kind: output, shape index: {}]  }
   0x1 LB: > { %s363_s13 = sadd.s32 4294967295, %s437_s12   ;;  %p367_p0 = scmp.ge.s32.totalorder %s437_s12, 1  ;;  %s437_s12 = sphi %s459_s12, %s13_s12  }
   0x2   : > { %p138_p1 = scmp.lt.s32.totalorder %s437_s12, 3 }
   0x4   : > { %p139_p2 = pnand %p367_p0, %p138_p1 }
   0x5   : > { %s368_s30 = sshll.u32 (!%p139_p2), %s363_s13, 4 }
   0x6   : > { %142 = sbr.rel (%p139_p2) target bundleno = 205 (0xcd), region = 32  ;;  %p163_p3 = scmp.lt.s32.totalorder (!%p139_p2), %s368_s30, 31 }
   0xb   : > { %v205_v0 = vld [vmem:[%s573_s1 + $0x78] sm:$0xff]  ;;  %v204_v1 = vld [vmem:[%s573_s1 + $0x70] sm:$0xff]  ;;  %v203_v2 = vld [vmem:[%s573_s1 + $0x68] sm:$0xff]  ;;  %s577_s30 = smov (!%p163_p3, %s368_s30), 31 }
   0xc   : > { %375 = vmatpush.msra.mxu2 %v205_v0  ;;  %376 = vmatpush.msra.mxu3 %v205_v0  ;;  %v202_v3 = vld [vmem:[%s573_s1 + $0x60] sm:$0xff]  ;;  %v201_v4 = vld [vmem:[%s573_s1 + $0x58] sm:$0xff]  ;;  %v200_v5 = vld [vmem:[%s573_s1 + $0x50] sm:$0xff]  ;;  %s369_s15 = sshll.u32 %s577_s30, 3 }
   0xd   : > { %210 = vmatpush.msra.mxu0 %v205_v0  ;;  %374 = vmatpush.msra.mxu1 %v205_v0  ;;  %v199_v6 = vld [vmem:[%s573_s1 + $0x48] sm:$0xff]  ;;  %v198_v7 = vld [vmem:[%s573_s1 + $0x40] sm:$0xff]  ;;  %v197_v8 = vld [vmem:[%s573_s1 + $0x38] sm:$0xff]  ;;  %s522_s22 = scalar_lea.vmem %s572_s0, %s369_s15  ;;  %s551_s29 = scalar_lea.vmem %s575_s3, %s369_s15 }
   0xe   : > { %378 = vmatpush.msra.mxu2 %v204_v1  ;;  %379 = vmatpush.msra.mxu3 %v204_v1  ;;  %v196_v9 = vld [vmem:[%s573_s1 + $0x30] sm:$0xff]  ;;  %v195_v10 = vld [vmem:[%s573_s1 + $0x28] sm:$0xff]  ;;  %v194_v11 = vld [vmem:[%s573_s1 + $0x20] sm:$0xff] }
   0xf   : > { %211 = vmatpush.msra.mxu0 %v204_v1  ;;  %377 = vmatpush.msra.mxu1 %v204_v1  ;;  %v193_v12 = vld [vmem:[%s573_s1 + $0x18] sm:$0xff]  ;;  %v192_v13 = vld [vmem:[%s573_s1 + $0x10] sm:$0xff]  ;;  %v191_v14 = vld [vmem:[%s573_s1 + $0x8] sm:$0xff] }
  0x10   : > { %381 = vmatpush.msra.mxu2 %v203_v2  ;;  %382 = vmatpush.msra.mxu3 %v203_v2  ;;  %v190_v15 = vld [vmem:[%s573_s1] sm:$0xff]  ;;  %v183_v20 = vld [vmem:[%s522_s22 + $0x48] sm:$0xff]  ;;  %v184_v24 = vld [vmem:[%s522_s22 + $0x50] sm:$0xff] }
  0x11   : > { %212 = vmatpush.msra.mxu0 %v203_v2  ;;  %380 = vmatpush.msra.mxu1 %v203_v2  ;;  %v182_v16 = vld [vmem:[%s522_s22 + $0x40] sm:$0xff]  ;;  %v187_v21 = vld [vmem:[%s522_s22 + $0x68] sm:$0xff]  ;;  %v188_v25 = vld [vmem:[%s522_s22 + $0x70] sm:$0xff] }
  0x12   : > { %384 = vmatpush.msra.mxu2 %v202_v3  ;;  %385 = vmatpush.msra.mxu3 %v202_v3  ;;  %v186_v17 = vld [vmem:[%s522_s22 + $0x60] sm:$0xff]  ;;  %v175_v22 = vld [vmem:[%s522_s22 + $0x8] sm:$0xff]  ;;  %v176_v26 = vld [vmem:[%s522_s22 + $0x10] sm:$0xff] }
  0x13   : > { %213 = vmatpush.msra.mxu0 %v202_v3  ;;  %383 = vmatpush.msra.mxu1 %v202_v3  ;;  %v174_v18 = vld [vmem:[%s522_s22] sm:$0xff]  ;;  %v179_v23 = vld [vmem:[%s522_s22 + $0x28] sm:$0xff]  ;;  %v180_v27 = vld [vmem:[%s522_s22 + $0x30] sm:$0xff] }
  0x14   : > { %387 = vmatpush.msra.mxu2 %v201_v4  ;;  %388 = vmatpush.msra.mxu3 %v201_v4  ;;  %v178_v19 = vld [vmem:[%s522_s22 + $0x20] sm:$0xff]  ;;  %v185_v28 = vld [vmem:[%s522_s22 + $0x58] sm:$0xff] }
  0x15   : > { %214 = vmatpush.msra.mxu0 %v201_v4  ;;  %386 = vmatpush.msra.mxu1 %v201_v4  ;;  %v189_v29 = vld [vmem:[%s522_s22 + $0x78] sm:$0xff]  ;;  %v430_v32 = vld [vmem:[%s574_s2] ss:$0 sm:$0xff] }
  0x16   : > { %390 = vmatpush.msra.mxu2 %v200_v5  ;;  %391 = vmatpush.msra.mxu3 %v200_v5  ;;  %v177_v30 = vld [vmem:[%s522_s22 + $0x18] sm:$0xff] }
  0x17   : > { %215 = vmatpush.msra.mxu0 %v200_v5  ;;  %389 = vmatpush.msra.mxu1 %v200_v5  ;;  %v181_v31 = vld [vmem:[%s522_s22 + $0x38] sm:$0xff] }
  0x18   : > { %393 = vmatpush.msra.mxu2 %v199_v6  ;;  %394 = vmatpush.msra.mxu3 %v199_v6 }
  0x19   : > { %216 = vmatpush.msra.mxu0 %v199_v6  ;;  %392 = vmatpush.msra.mxu1 %v199_v6 }
  0x1a   : > { %396 = vmatpush.msra.mxu2 %v198_v7  ;;  %397 = vmatpush.msra.mxu3 %v198_v7 }
  0x1b   : > { %217 = vmatpush.msra.mxu0 %v198_v7  ;;  %395 = vmatpush.msra.mxu1 %v198_v7 }
  0x1c   : > { %399 = vmatpush.msra.mxu2 %v197_v8  ;;  %400 = vmatpush.msra.mxu3 %v197_v8 }
  0x1d   : > { %218 = vmatpush.msra.mxu0 %v197_v8  ;;  %398 = vmatpush.msra.mxu1 %v197_v8 }
  0x1e   : > { %402 = vmatpush.msra.mxu2 %v196_v9  ;;  %403 = vmatpush.msra.mxu3 %v196_v9 }
  0x1f   : > { %219 = vmatpush.msra.mxu0 %v196_v9  ;;  %401 = vmatpush.msra.mxu1 %v196_v9 }
  0x20   : > { %405 = vmatpush.msra.mxu2 %v195_v10  ;;  %406 = vmatpush.msra.mxu3 %v195_v10 }
  0x21   : > { %220 = vmatpush.msra.mxu0 %v195_v10  ;;  %404 = vmatpush.msra.mxu1 %v195_v10 }
  0x22   : > { %408 = vmatpush.msra.mxu2 %v194_v11  ;;  %409 = vmatpush.msra.mxu3 %v194_v11 }
  0x23   : > { %221 = vmatpush.msra.mxu0 %v194_v11  ;;  %407 = vmatpush.msra.mxu1 %v194_v11 }
  0x24   : > { %411 = vmatpush.msra.mxu2 %v193_v12  ;;  %412 = vmatpush.msra.mxu3 %v193_v12 }
  0x25   : > { %222 = vmatpush.msra.mxu0 %v193_v12  ;;  %410 = vmatpush.msra.mxu1 %v193_v12 }
  0x26   : > { %414 = vmatpush.msra.mxu2 %v192_v13  ;;  %415 = vmatpush.msra.mxu3 %v192_v13 }
  0x27   : > { %223 = vmatpush.msra.mxu0 %v192_v13  ;;  %413 = vmatpush.msra.mxu1 %v192_v13 }
  0x28   : > { %417 = vmatpush.msra.mxu2 %v191_v14  ;;  %418 = vmatpush.msra.mxu3 %v191_v14 }
  0x29   : > { %224 = vmatpush.msra.mxu0 %v191_v14  ;;  %416 = vmatpush.msra.mxu1 %v191_v14 }
  0x2a   : > { %420 = vmatpush.msra.mxu2 %v190_v15  ;;  %421 = vmatpush.msra.mxu3 %v190_v15 }
  0x2b   : > { %250 = vmatmul.f32.vlgmr.msra.gmra.mxu2 %v182_v16  ;;  %262 = vmatmul.f32.vlgmr.msra.gmra.mxu3 %v186_v17 }
  0x2c   : > { %225 = vmatpush.msra.mxu0 %v190_v15  ;;  %419 = vmatpush.msra.mxu1 %v190_v15 }
  0x2d   : > { %226 = vmatmul.f32.vlgmr.msra.gmra.mxu0 %v174_v18  ;;  %238 = vmatmul.f32.vlgmr.msra.gmra.mxu1 %v178_v19 }
  0x33   : > { %253 = vmatmul.f32.gmra.mxu2 %v183_v20  ;;  %265 = vmatmul.f32.gmra.mxu3 %v187_v21 }
  0x35   : > { %229 = vmatmul.f32.gmra.mxu0 %v175_v22  ;;  %241 = vmatmul.f32.gmra.mxu1 %v179_v23 }
  0x3b   : > { %256 = vmatmul.f32.gmra.mxu2 %v184_v24  ;;  %268 = vmatmul.f32.gmra.mxu3 %v188_v25 }
  0x3d   : > { %232 = vmatmul.f32.gmra.mxu0 %v176_v26  ;;  %244 = vmatmul.f32.gmra.mxu1 %v180_v27 }
  0x43   : > { %259 = vmatmul.f32.gmra.mxu2 %v185_v28  ;;  %271 = vmatmul.f32.gmra.mxu3 %v189_v29 }
  0x45   : > { %235 = vmatmul.f32.gmra.mxu0 %v177_v30  ;;  %247 = vmatmul.f32.gmra.mxu1 %v181_v31 }
  0xaa   : > { %v227_v33 = vpop.f32.mrf.mxu0  ;;  %v239_v34 = vpop.f32.mrf.mxu1 }
  0xab   : > { %v228_v35 = vadd.f32 %v430_v32, %v227_v33  ;;  %v240_v36 = vadd.f32 %v430_v32, %v239_v34 }
  0xad   : > { %v275_v37 = vmax.f32 %v228_v35, 0.0  ;;  %v279_v38 = vmax.f32 %v240_v36, 0.0 }
  0xae   : > { %v251_v39 = vpop.f32.mrf.mxu2  ;;  %v263_v40 = vpop.f32.mrf.mxu3 }
  0xaf   : > { %291 = vst [vmem:[%s551_s29] sm:$0xff] %v275_v37  ;;  %v252_v41 = vadd.f32 %v430_v32, %v251_v39  ;;  %v264_v42 = vadd.f32 %v430_v32, %v263_v40 }
  0xb0   : > { %295 = vst [vmem:[%s551_s29 + $0x20] sm:$0xff] %v279_v38 }
  0xb1   : > { %v283_v43 = vmax.f32 %v252_v41, 0.0  ;;  %v287_v44 = vmax.f32 %v264_v42, 0.0 }
  0xb2   : > { %v230_v45 = vpop.f32.mrf.mxu0  ;;  %v242_v46 = vpop.f32.mrf.mxu1 }
  0xb3   : > { %299 = vst [vmem:[%s551_s29 + $0x40] sm:$0xff] %v283_v43  ;;  %v231_v47 = vadd.f32 %v430_v32, %v230_v45  ;;  %v243_v48 = vadd.f32 %v430_v32, %v242_v46 }
  0xb4   : > { %303 = vst [vmem:[%s551_s29 + $0x60] sm:$0xff] %v287_v44 }
  0xb5   : > { %v276_v49 = vmax.f32 %v231_v47, 0.0  ;;  %v280_v50 = vmax.f32 %v243_v48, 0.0 }
  0xb6   : > { %v254_v51 = vpop.f32.mrf.mxu2  ;;  %v266_v52 = vpop.f32.mrf.mxu3 }
  0xb7   : > { %292 = vst [vmem:[%s551_s29 + $0x8] sm:$0xff] %v276_v49  ;;  %v255_v53 = vadd.f32 %v430_v32, %v254_v51  ;;  %v267_v54 = vadd.f32 %v430_v32, %v266_v52 }
  0xb8   : > { %296 = vst [vmem:[%s551_s29 + $0x28] sm:$0xff] %v280_v50 }
  0xb9   : > { %v284_v55 = vmax.f32 %v255_v53, 0.0  ;;  %v288_v56 = vmax.f32 %v267_v54, 0.0 }
  0xba   : > { %v233_v57 = vpop.f32.mrf.mxu0  ;;  %v245_v58 = vpop.f32.mrf.mxu1 }
  0xbb   : > { %300 = vst [vmem:[%s551_s29 + $0x48] sm:$0xff] %v284_v55  ;;  %v234_v59 = vadd.f32 %v430_v32, %v233_v57  ;;  %v246_v60 = vadd.f32 %v430_v32, %v245_v58 }
  0xbc   : > { %304 = vst [vmem:[%s551_s29 + $0x68] sm:$0xff] %v288_v56 }
  0xbd   : > { %v277_v61 = vmax.f32 %v234_v59, 0.0  ;;  %v281_v62 = vmax.f32 %v246_v60, 0.0 }
  0xbe   : > { %v257_v63 = vpop.f32.mrf.mxu2  ;;  %v269_v0 = vpop.f32.mrf.mxu3 }
  0xbf   : > { %293 = vst [vmem:[%s551_s29 + $0x10] sm:$0xff] %v277_v61  ;;  %v258_v1 = vadd.f32 %v430_v32, %v257_v63  ;;  %v270_v2 = vadd.f32 %v430_v32, %v269_v0 }
  0xc0   : > { %297 = vst [vmem:[%s551_s29 + $0x30] sm:$0xff] %v281_v62 }
  0xc1   : > { %v285_v3 = vmax.f32 %v258_v1, 0.0  ;;  %v289_v4 = vmax.f32 %v270_v2, 0.0 }
  0xc2   : > { %v236_v5 = vpop.f32.mrf.mxu0  ;;  %v248_v6 = vpop.f32.mrf.mxu1 }
  0xc3   : > { %301 = vst [vmem:[%s551_s29 + $0x50] sm:$0xff] %v285_v3  ;;  %v237_v7 = vadd.f32 %v430_v32, %v236_v5  ;;  %v249_v8 = vadd.f32 %v430_v32, %v248_v6 }
  0xc4   : > { %305 = vst [vmem:[%s551_s29 + $0x70] sm:$0xff] %v289_v4 }
  0xc5   : > { %v278_v9 = vmax.f32 %v237_v7, 0.0  ;;  %v282_v10 = vmax.f32 %v249_v8, 0.0 }
  0xc6   : > { %v260_v11 = vpop.f32.mrf.mxu2  ;;  %v272_v12 = vpop.f32.mrf.mxu3 }
  0xc7   : > { %294 = vst [vmem:[%s551_s29 + $0x18] sm:$0xff] %v278_v9  ;;  %v261_v13 = vadd.f32 %v430_v32, %v260_v11  ;;  %v273_v14 = vadd.f32 %v430_v32, %v272_v12 }
  0xc8   : > { %298 = vst [vmem:[%s551_s29 + $0x38] sm:$0xff] %v282_v10 }
  0xc9   : > { %v286_v15 = vmax.f32 %v261_v13, 0.0  ;;  %v290_v16 = vmax.f32 %v273_v14, 0.0 }
  0xcb   : > { %302 = vst [vmem:[%s551_s29 + $0x58] sm:$0xff] %v286_v15 }
  0xcc   : > { %306 = vst [vmem:[%s551_s29 + $0x78] sm:$0xff] %v290_v16 }
  0xcd PF: > { %s13_s12 = sadd.s32 1, %s437_s12  }
  0xce   : > { %p10_p4 = scmp.ge.s32.totalorder %s13_s12, 4  }
  0xd0   :  { %12 = sbr.rel (!%p10_p4) target bundleno = 1 (0x1), region = 62 }

// kernel: gnn_res_forward.7
= control target key start
LH: loop header
LB: loop body
LE: loop exit
PB: predicated region body
PF: predicated region fallthrough
CT: control target
= control target key end

     0   :  { %s443_s12 = smov 0   ;;  %s556_s0 = inlined_call_operand.vmem [shape: f32[256,128], index: 0, kind: input, shape index: {}]   ;;  %s557_s1 = inlined_call_operand.vmem [shape: f32[128,128], index: 1, kind: input, shape index: {}]   ;;  %s558_s2 = inlined_call_operand.vmem [shape: f32[1,128], index: 2, kind: input, shape index: {}]   ;;  %s559_s3 = inlined_call_operand.vmem [shape: f32[256,128], index: 3, kind: output, shape index: {}]  }
   0x1 LB: > { %s347_s13 = sadd.s32 4294967295, %s421_s12   ;;  %p351_p0 = scmp.ge.s32.totalorder %s421_s12, 1  ;;  %s421_s12 = sphi %s443_s12, %s13_s12  }
   0x2   : > { %p138_p1 = scmp.lt.s32.totalorder %s421_s12, 3 }
   0x4   : > { %p139_p2 = pnand %p351_p0, %p138_p1 }
   0x5   : > { %s352_s30 = sshll.u32 (!%p139_p2), %s347_s13, 4 }
   0x6   : > { %142 = sbr.rel (%p139_p2) target bundleno = 203 (0xcb), region = 32  ;;  %p163_p3 = scmp.lt.s32.totalorder (!%p139_p2), %s352_s30, 31 }
   0xb   : > { %v205_v0 = vld [vmem:[%s557_s1 + $0x78] sm:$0xff]  ;;  %v204_v1 = vld [vmem:[%s557_s1 + $0x70] sm:$0xff]  ;;  %v203_v2 = vld [vmem:[%s557_s1 + $0x68] sm:$0xff]  ;;  %s561_s30 = smov (!%p163_p3, %s352_s30), 31 }
   0xc   : > { %359 = vmatpush.msra.mxu2 %v205_v0  ;;  %360 = vmatpush.msra.mxu3 %v205_v0  ;;  %v202_v3 = vld [vmem:[%s557_s1 + $0x60] sm:$0xff]  ;;  %v201_v4 = vld [vmem:[%s557_s1 + $0x58] sm:$0xff]  ;;  %v200_v5 = vld [vmem:[%s557_s1 + $0x50] sm:$0xff]  ;;  %s353_s15 = sshll.u32 %s561_s30, 3 }
   0xd   : > { %210 = vmatpush.msra.mxu0 %v205_v0  ;;  %358 = vmatpush.msra.mxu1 %v205_v0  ;;  %v199_v6 = vld [vmem:[%s557_s1 + $0x48] sm:$0xff]  ;;  %v198_v7 = vld [vmem:[%s557_s1 + $0x40] sm:$0xff]  ;;  %v197_v8 = vld [vmem:[%s557_s1 + $0x38] sm:$0xff]  ;;  %s506_s22 = scalar_lea.vmem %s556_s0, %s353_s15  ;;  %s535_s29 = scalar_lea.vmem %s559_s3, %s353_s15 }
   0xe   : > { %362 = vmatpush.msra.mxu2 %v204_v1  ;;  %363 = vmatpush.msra.mxu3 %v204_v1  ;;  %v196_v9 = vld [vmem:[%s557_s1 + $0x30] sm:$0xff]  ;;  %v195_v10 = vld [vmem:[%s557_s1 + $0x28] sm:$0xff]  ;;  %v194_v11 = vld [vmem:[%s557_s1 + $0x20] sm:$0xff] }
   0xf   : > { %211 = vmatpush.msra.mxu0 %v204_v1  ;;  %361 = vmatpush.msra.mxu1 %v204_v1  ;;  %v193_v12 = vld [vmem:[%s557_s1 + $0x18] sm:$0xff]  ;;  %v192_v13 = vld [vmem:[%s557_s1 + $0x10] sm:$0xff]  ;;  %v191_v14 = vld [vmem:[%s557_s1 + $0x8] sm:$0xff] }
  0x10   : > { %365 = vmatpush.msra.mxu2 %v203_v2  ;;  %366 = vmatpush.msra.mxu3 %v203_v2  ;;  %v190_v15 = vld [vmem:[%s557_s1] sm:$0xff]  ;;  %v183_v20 = vld [vmem:[%s506_s22 + $0x48] sm:$0xff]  ;;  %v184_v24 = vld [vmem:[%s506_s22 + $0x50] sm:$0xff] }
  0x11   : > { %212 = vmatpush.msra.mxu0 %v203_v2  ;;  %364 = vmatpush.msra.mxu1 %v203_v2  ;;  %v182_v16 = vld [vmem:[%s506_s22 + $0x40] sm:$0xff]  ;;  %v187_v21 = vld [vmem:[%s506_s22 + $0x68] sm:$0xff]  ;;  %v188_v25 = vld [vmem:[%s506_s22 + $0x70] sm:$0xff] }
  0x12   : > { %368 = vmatpush.msra.mxu2 %v202_v3  ;;  %369 = vmatpush.msra.mxu3 %v202_v3  ;;  %v186_v17 = vld [vmem:[%s506_s22 + $0x60] sm:$0xff]  ;;  %v175_v22 = vld [vmem:[%s506_s22 + $0x8] sm:$0xff]  ;;  %v176_v26 = vld [vmem:[%s506_s22 + $0x10] sm:$0xff] }
  0x13   : > { %213 = vmatpush.msra.mxu0 %v202_v3  ;;  %367 = vmatpush.msra.mxu1 %v202_v3  ;;  %v174_v18 = vld [vmem:[%s506_s22] sm:$0xff]  ;;  %v179_v23 = vld [vmem:[%s506_s22 + $0x28] sm:$0xff]  ;;  %v180_v27 = vld [vmem:[%s506_s22 + $0x30] sm:$0xff] }
  0x14   : > { %371 = vmatpush.msra.mxu2 %v201_v4  ;;  %372 = vmatpush.msra.mxu3 %v201_v4  ;;  %v178_v19 = vld [vmem:[%s506_s22 + $0x20] sm:$0xff]  ;;  %v185_v28 = vld [vmem:[%s506_s22 + $0x58] sm:$0xff] }
  0x15   : > { %214 = vmatpush.msra.mxu0 %v201_v4  ;;  %370 = vmatpush.msra.mxu1 %v201_v4  ;;  %v189_v29 = vld [vmem:[%s506_s22 + $0x78] sm:$0xff]  ;;  %v414_v32 = vld [vmem:[%s558_s2] ss:$0 sm:$0xff] }
  0x16   : > { %374 = vmatpush.msra.mxu2 %v200_v5  ;;  %375 = vmatpush.msra.mxu3 %v200_v5  ;;  %v177_v30 = vld [vmem:[%s506_s22 + $0x18] sm:$0xff] }
  0x17   : > { %215 = vmatpush.msra.mxu0 %v200_v5  ;;  %373 = vmatpush.msra.mxu1 %v200_v5  ;;  %v181_v31 = vld [vmem:[%s506_s22 + $0x38] sm:$0xff] }
  0x18   : > { %377 = vmatpush.msra.mxu2 %v199_v6  ;;  %378 = vmatpush.msra.mxu3 %v199_v6 }
  0x19   : > { %216 = vmatpush.msra.mxu0 %v199_v6  ;;  %376 = vmatpush.msra.mxu1 %v199_v6 }
  0x1a   : > { %380 = vmatpush.msra.mxu2 %v198_v7  ;;  %381 = vmatpush.msra.mxu3 %v198_v7 }
  0x1b   : > { %217 = vmatpush.msra.mxu0 %v198_v7  ;;  %379 = vmatpush.msra.mxu1 %v198_v7 }
  0x1c   : > { %383 = vmatpush.msra.mxu2 %v197_v8  ;;  %384 = vmatpush.msra.mxu3 %v197_v8 }
  0x1d   : > { %218 = vmatpush.msra.mxu0 %v197_v8  ;;  %382 = vmatpush.msra.mxu1 %v197_v8 }
  0x1e   : > { %386 = vmatpush.msra.mxu2 %v196_v9  ;;  %387 = vmatpush.msra.mxu3 %v196_v9 }
  0x1f   : > { %219 = vmatpush.msra.mxu0 %v196_v9  ;;  %385 = vmatpush.msra.mxu1 %v196_v9 }
  0x20   : > { %389 = vmatpush.msra.mxu2 %v195_v10  ;;  %390 = vmatpush.msra.mxu3 %v195_v10 }
  0x21   : > { %220 = vmatpush.msra.mxu0 %v195_v10  ;;  %388 = vmatpush.msra.mxu1 %v195_v10 }
  0x22   : > { %392 = vmatpush.msra.mxu2 %v194_v11  ;;  %393 = vmatpush.msra.mxu3 %v194_v11 }
  0x23   : > { %221 = vmatpush.msra.mxu0 %v194_v11  ;;  %391 = vmatpush.msra.mxu1 %v194_v11 }
  0x24   : > { %395 = vmatpush.msra.mxu2 %v193_v12  ;;  %396 = vmatpush.msra.mxu3 %v193_v12 }
  0x25   : > { %222 = vmatpush.msra.mxu0 %v193_v12  ;;  %394 = vmatpush.msra.mxu1 %v193_v12 }
  0x26   : > { %398 = vmatpush.msra.mxu2 %v192_v13  ;;  %399 = vmatpush.msra.mxu3 %v192_v13 }
  0x27   : > { %223 = vmatpush.msra.mxu0 %v192_v13  ;;  %397 = vmatpush.msra.mxu1 %v192_v13 }
  0x28   : > { %401 = vmatpush.msra.mxu2 %v191_v14  ;;  %402 = vmatpush.msra.mxu3 %v191_v14 }
  0x29   : > { %224 = vmatpush.msra.mxu0 %v191_v14  ;;  %400 = vmatpush.msra.mxu1 %v191_v14 }
  0x2a   : > { %404 = vmatpush.msra.mxu2 %v190_v15  ;;  %405 = vmatpush.msra.mxu3 %v190_v15 }
  0x2b   : > { %250 = vmatmul.f32.vlgmr.msra.gmra.mxu2 %v182_v16  ;;  %262 = vmatmul.f32.vlgmr.msra.gmra.mxu3 %v186_v17 }
  0x2c   : > { %225 = vmatpush.msra.mxu0 %v190_v15  ;;  %403 = vmatpush.msra.mxu1 %v190_v15 }
  0x2d   : > { %226 = vmatmul.f32.vlgmr.msra.gmra.mxu0 %v174_v18  ;;  %238 = vmatmul.f32.vlgmr.msra.gmra.mxu1 %v178_v19 }
  0x33   : > { %253 = vmatmul.f32.gmra.mxu2 %v183_v20  ;;  %265 = vmatmul.f32.gmra.mxu3 %v187_v21 }
  0x35   : > { %229 = vmatmul.f32.gmra.mxu0 %v175_v22  ;;  %241 = vmatmul.f32.gmra.mxu1 %v179_v23 }
  0x3b   : > { %256 = vmatmul.f32.gmra.mxu2 %v184_v24  ;;  %268 = vmatmul.f32.gmra.mxu3 %v188_v25 }
  0x3d   : > { %232 = vmatmul.f32.gmra.mxu0 %v176_v26  ;;  %244 = vmatmul.f32.gmra.mxu1 %v180_v27 }
  0x43   : > { %259 = vmatmul.f32.gmra.mxu2 %v185_v28  ;;  %271 = vmatmul.f32.gmra.mxu3 %v189_v29 }
  0x45   : > { %235 = vmatmul.f32.gmra.mxu0 %v177_v30  ;;  %247 = vmatmul.f32.gmra.mxu1 %v181_v31 }
  0xaa   : > { %v227_v33 = vpop.f32.mrf.mxu0  ;;  %v239_v34 = vpop.f32.mrf.mxu1 }
  0xab   : > { %v228_v35 = vadd.f32 %v414_v32, %v227_v33  ;;  %v240_v36 = vadd.f32 %v414_v32, %v239_v34 }
  0xad   : > { %275 = vst [vmem:[%s535_s29] sm:$0xff] %v228_v35 }
  0xae   : > { %279 = vst [vmem:[%s535_s29 + $0x20] sm:$0xff] %v240_v36  ;;  %v251_v37 = vpop.f32.mrf.mxu2  ;;  %v263_v38 = vpop.f32.mrf.mxu3 }
  0xaf   : > { %v252_v39 = vadd.f32 %v414_v32, %v251_v37  ;;  %v264_v40 = vadd.f32 %v414_v32, %v263_v38 }
  0xb1   : > { %283 = vst [vmem:[%s535_s29 + $0x40] sm:$0xff] %v252_v39 }
  0xb2   : > { %287 = vst [vmem:[%s535_s29 + $0x60] sm:$0xff] %v264_v40  ;;  %v230_v41 = vpop.f32.mrf.mxu0  ;;  %v242_v42 = vpop.f32.mrf.mxu1 }
  0xb3   : > { %v231_v43 = vadd.f32 %v414_v32, %v230_v41  ;;  %v243_v44 = vadd.f32 %v414_v32, %v242_v42 }
  0xb5   : > { %276 = vst [vmem:[%s535_s29 + $0x8] sm:$0xff] %v231_v43 }
  0xb6   : > { %280 = vst [vmem:[%s535_s29 + $0x28] sm:$0xff] %v243_v44  ;;  %v254_v45 = vpop.f32.mrf.mxu2  ;;  %v266_v46 = vpop.f32.mrf.mxu3 }
  0xb7   : > { %v255_v47 = vadd.f32 %v414_v32, %v254_v45  ;;  %v267_v48 = vadd.f32 %v414_v32, %v266_v46 }
  0xb9   : > { %284 = vst [vmem:[%s535_s29 + $0x48] sm:$0xff] %v255_v47 }
  0xba   : > { %288 = vst [vmem:[%s535_s29 + $0x68] sm:$0xff] %v267_v48  ;;  %v233_v49 = vpop.f32.mrf.mxu0  ;;  %v245_v50 = vpop.f32.mrf.mxu1 }
  0xbb   : > { %v234_v51 = vadd.f32 %v414_v32, %v233_v49  ;;  %v246_v52 = vadd.f32 %v414_v32, %v245_v50 }
  0xbd   : > { %277 = vst [vmem:[%s535_s29 + $0x10] sm:$0xff] %v234_v51 }
  0xbe   : > { %281 = vst [vmem:[%s535_s29 + $0x30] sm:$0xff] %v246_v52  ;;  %v257_v53 = vpop.f32.mrf.mxu2  ;;  %v269_v54 = vpop.f32.mrf.mxu3 }
  0xbf   : > { %v258_v55 = vadd.f32 %v414_v32, %v257_v53  ;;  %v270_v56 = vadd.f32 %v414_v32, %v269_v54 }
  0xc1   : > { %285 = vst [vmem:[%s535_s29 + $0x50] sm:$0xff] %v258_v55 }
  0xc2   : > { %289 = vst [vmem:[%s535_s29 + $0x70] sm:$0xff] %v270_v56  ;;  %v236_v57 = vpop.f32.mrf.mxu0  ;;  %v248_v58 = vpop.f32.mrf.mxu1 }
  0xc3   : > { %v237_v59 = vadd.f32 %v414_v32, %v236_v57  ;;  %v249_v60 = vadd.f32 %v414_v32, %v248_v58 }
  0xc5   : > { %278 = vst [vmem:[%s535_s29 + $0x18] sm:$0xff] %v237_v59 }
  0xc6   : > { %282 = vst [vmem:[%s535_s29 + $0x38] sm:$0xff] %v249_v60  ;;  %v260_v61 = vpop.f32.mrf.mxu2  ;;  %v272_v62 = vpop.f32.mrf.mxu3 }
  0xc7   : > { %v261_v63 = vadd.f32 %v414_v32, %v260_v61  ;;  %v273_v0 = vadd.f32 %v414_v32, %v272_v62 }
  0xc9   : > { %286 = vst [vmem:[%s535_s29 + $0x58] sm:$0xff] %v261_v63 }
  0xca   : > { %290 = vst [vmem:[%s535_s29 + $0x78] sm:$0xff] %v273_v0 }
  0xcb PF: > { %s13_s12 = sadd.s32 1, %s421_s12  }
  0xcc   : > { %p10_p4 = scmp.ge.s32.totalorder %s13_s12, 4  }
  0xce   :  { %12 = sbr.rel (!%p10_p4) target bundleno = 1 (0x1), region = 62 }

// kernel: gnn_res_forward.5
= control target key start
LH: loop header
LB: loop body
LE: loop exit
PB: predicated region body
PF: predicated region fallthrough
CT: control target
= control target key end

     0   :  { %s2003_s13 = smov 0   ;;  %s2005_s14 = smov 0   ;;  %s2311_s0 = inlined_call_operand.vmem [shape: s8[256,256], index: 0, kind: input, shape index: {}]   ;;  %s2312_s1 = inlined_call_operand.vmem [shape: bf16[256,128], index: 1, kind: input, shape index: {}]   ;;  %s2313_s2 = inlined_call_operand.vmem [shape: bf16[256,128], index: 2, kind: input, shape index: {}]   ;;  %s2314_s3 = inlined_call_operand.vmem [shape: f32[256,1], index: 3, kind: input, shape index: {}]   ;;  %s2315_s4 = inlined_call_operand.vmem [shape: bf16[128,128], index: 4, kind: input, shape index: {}]   ;;  %s2316_s5 = inlined_call_operand.vmem [shape: f32[1,128], index: 5, kind: input, shape index: {}]   ;;  %s2317_s6 = inlined_call_operand.vmem [shape: bf16[128,128], index: 6, kind: input, shape index: {}]   ;;  %s2318_s7 = inlined_call_operand.vmem [shape: f32[1,128], index: 7, kind: input, shape index: {}]   ;;  %s2319_s8 = inlined_call_operand.vmem [shape: bf16[128,128], index: 8, kind: input, shape index: {}]   ;;  %s2320_s9 = inlined_call_operand.vmem [shape: f32[1,128], index: 9, kind: input, shape index: {}]   ;;  %s2321_s10 = inlined_call_operand.vmem [shape: f32[256,128], index: 10, kind: output, shape index: {}]  }
   0x1   :  { %s2007_s15 = smov 0  }
   0x2 LB: > { %s32_s16 = sadd.s32 1, %s1941_s14  ;;  %p1615_p0 = scmp.ge.s32.totalorder %s1945_s15, 1  ;;  %s1945_s15 = sphi %s2007_s15, %s20_s15   ;;  %s1941_s14 = sphi %s2005_s14, %s2323_s14   ;;  %s1937_s13 = sphi %s2003_s13, %s2322_s13  }
   0x3   : > { %p34_p1 = scmp.ge.s32.totalorder %s32_s16, 2  ;;  %p366_p2 = scmp.lt.s32.totalorder %s1945_s15, 3 }
   0x5   : > { %s2325_s16 = smov (%p34_p1, %s32_s16), 0  ;;  %p367_p3 = pnand %p1615_p0, %p366_p2 }
   0x6   : > { %s1619_s19 = sshll.u32 (!%p367_p3), %s1937_s13, 4  ;;  %s1616_s23 = sshll.u32 (!%p367_p3), %s1937_s13, 2 }
   0x7   : > { %370 = sbr.rel (%p367_p3) target bundleno = 621 (0x26d), region = 60  ;;  %p443_p4 = scmp.lt.s32.totalorder (!%p367_p3), %s1619_s19, 31 }
   0x8   : > { %p426_p5 = scmp.lt.s32.totalorder (!%p367_p3), %s1616_s23, 7 }
   0xc   : > { %v1835_v0 = vld [vmem:[%s2315_s4 + $0x38] sm:$0xff]  ;;  %v1834_v1 = vld [vmem:[%s2315_s4 + $0x30] sm:$0xff]  ;;  %s2327_s19 = smov (!%p443_p4, %s1619_s19), 31  ;;  %v1833_v2 = vld [vmem:[%s2315_s4 + $0x28] sm:$0xff]  ;;  %v1947_v3 = vmov 0   ;;  %s2329_s23 = smov (!%p426_p5, %s1616_s23), 7 }
   0xd   : > { %1868 = vmatpush.bf16.msra.mxu1 %v1835_v0  ;;  %1869 = vmatpush.bf16.msra.mxu2 %v1835_v0  ;;  %s1622_s22 = sshll.u32 %s2327_s19, 3  ;;  %v1832_v5 = vld [vmem:[%s2315_s4 + $0x20] sm:$0xff]  ;;  %v1831_v6 = vld [vmem:[%s2315_s4 + $0x18] sm:$0xff]  ;;  %v1830_v8 = vld [vmem:[%s2315_s4 + $0x10] sm:$0xff]  ;;  %s1620_s21 = sshll.u32 %s2327_s19, 2 }
   0xe   : > { %1870 = vmatpush.bf16.msra.mxu3 %v1835_v0  ;;  %612 = vmatpush.bf16.msra.mxu0 %v1835_v0  ;;  %s2041_s27 = scalar_lea.vmem %s2314_s3, %s1622_s22  ;;  %v1829_v9 = vld [vmem:[%s2315_s4 + $0x8] sm:$0xff]  ;;  %v1828_v11 = vld [vmem:[%s2315_s4] sm:$0xff]  ;;  %s2065_s28 = scalar_lea.vmem %s2313_s2, %s1620_s21  ;;  %v1851_v12 = vld [vmem:[%s2312_s1 + $0x78] sm:$0xff] }
   0xf   : > { %1917 = vset.pattern.permute.xlu0 %v1947_v3  ;;  %v1058_v4 = vld [vmem:[%s2041_s27] sm:$0xff]  ;;  %1918 = vset.pattern.permute.xlu1 %v1947_v3  ;;  %v1059_v7 = vld [vmem:[%s2041_s27 + $0x8] sm:$0xff]  ;;  %v1064_v10 = vld [vmem:[%s2041_s27 + $0x30] sm:$0xff]  ;;  %s1819_s24 = sshll.u32 %s2329_s23, 4  ;;  %s2242_s21 = scalar_lea.vmem %s2321_s10, %s1622_s22 }
  0x10   : > { %1076 = vperm.xlu0 %1917, %v1058_v4   ;;  %1919 = vset.pattern.permute.xlu2 %v1947_v3  ;;  %v1843_v13 = vld [vmem:[%s2312_s1 + $0x38] sm:$0xff]  ;;  %v1822_v14 = vld [vmem:[%s2065_s28 + $0x10] sm:$0xff]  ;;  %v1824_v15 = vld [vmem:[%s2065_s28 + $0x20] sm:$0xff]  ;;  %s2115_s12 = scalar_lea.vmem %s2311_s0, %s1819_s24 }
  0x11   : > { %1871 = vmatpush.bf16.msra.mxu1 %v1834_v1  ;;  %1872 = vmatpush.bf16.msra.mxu2 %v1834_v1  ;;  %v1850_v16 = vld [vmem:[%s2312_s1 + $0x70] sm:$0xff]  ;;  %v1067_v19 = vld [vmem:[%s2041_s27 + $0x48] sm:$0xff]  ;;  %v1848_v22 = vld [vmem:[%s2312_s1 + $0x60] sm:$0xff] }
  0x12   : > { %1873 = vmatpush.bf16.msra.mxu3 %v1834_v1  ;;  %613 = vmatpush.bf16.msra.mxu0 %v1834_v1  ;;  %v1842_v17 = vld [vmem:[%s2312_s1 + $0x30] sm:$0xff]  ;;  %v1849_v20 = vld [vmem:[%s2312_s1 + $0x68] sm:$0xff]  ;;  %v1840_v23 = vld [vmem:[%s2312_s1 + $0x20] sm:$0xff] }
  0x13   : > { %v1060_v18 = vld [vmem:[%s2041_s27 + $0x10] sm:$0xff]  ;;  %v1841_v21 = vld [vmem:[%s2312_s1 + $0x28] sm:$0xff]  ;;  %v1061_v24 = vld [vmem:[%s2041_s27 + $0x18] sm:$0xff] }
  0x14   : > { %1086 = vperm.xlu1 %1918, %v1060_v18   ;;  %v1070_v25 = vld [vmem:[%s2041_s27 + $0x60] sm:$0xff]  ;;  %v1847_v26 = vld [vmem:[%s2312_s1 + $0x58] sm:$0xff]  ;;  %v1825_v29 = vld [vmem:[%s2065_s28 + $0x28] sm:$0xff] }
  0x15   : > { %1874 = vmatpush.bf16.msra.mxu1 %v1833_v2  ;;  %1875 = vmatpush.bf16.msra.mxu2 %v1833_v2  ;;  %v1839_v27 = vld [vmem:[%s2312_s1 + $0x18] sm:$0xff]  ;;  %v1846_v30 = vld [vmem:[%s2312_s1 + $0x50] sm:$0xff]  ;;  %v693_v34 = vld [vmem:[%s2115_s12] sm:$0xff] }
  0x16   : > { %1876 = vmatpush.bf16.msra.mxu3 %v1833_v2  ;;  %614 = vmatpush.bf16.msra.mxu0 %v1833_v2  ;;  %v1823_v28 = vld [vmem:[%s2065_s28 + $0x18] sm:$0xff]  ;;  %v1838_v31 = vld [vmem:[%s2312_s1 + $0x10] sm:$0xff]  ;;  %v694_v35 = vld [vmem:[%s2115_s12 + $0x8] sm:$0xff]  ;;  %v701_v38 = vunpack.c.0.s8 %v693_v34  ;;  %v703_v39 = vunpack.c.1.s8 %v693_v34  ;;  %v705_v53 = vunpack.c.2.s8 %v693_v34  ;;  %v707_v54 = vunpack.c.3.s8 %v693_v34 }
  0x17   : > { %v1065_v32 = vld [vmem:[%s2041_s27 + $0x38] sm:$0xff]  ;;  %v1845_v36 = vld [vmem:[%s2312_s1 + $0x48] sm:$0xff]  ;;  %v702_v40 = vunpack.c.0.s8 %v694_v35  ;;  %v704_v41 = vunpack.c.1.s8 %v694_v35  ;;  %v1844_v42 = vld [vmem:[%s2312_s1 + $0x40] sm:$0xff]  ;;  %v706_v55 = vunpack.c.2.s8 %v694_v35  ;;  %v708_v56 = vunpack.c.3.s8 %v694_v35 }
  0x18   : > { %1081 = vperm.xlu0 %1917, %v1059_v7   ;;  %v1073_v33 = vld [vmem:[%s2041_s27 + $0x78] sm:$0xff]  ;;  %v1837_v37 = vld [vmem:[%s2312_s1 + $0x8] sm:$0xff]  ;;  %v1836_v43 = vld [vmem:[%s2312_s1] sm:$0xff]  ;;  %v733_v45 = vcvt.s32.f32 %v701_v38  ;;  %v735_v46 = vcvt.s32.f32 %v703_v39  ;;  %v737_v57 = vcvt.s32.f32 %v705_v53  ;;  %v739_v58 = vcvt.s32.f32 %v707_v54 }
  0x19   : > { %1877 = vmatpush.bf16.msra.mxu1 %v1832_v5  ;;  %1878 = vmatpush.bf16.msra.mxu2 %v1832_v5  ;;  %v1068_v44 = vld [vmem:[%s2041_s27 + $0x50] sm:$0xff]  ;;  %v734_v47 = vcvt.s32.f32 %v702_v40  ;;  %v736_v48 = vcvt.s32.f32 %v704_v41  ;;  %v1071_v51 = vld [vmem:[%s2041_s27 + $0x68] sm:$0xff]  ;;  %v1062_v52 = vld [vmem:[%s2041_s27 + $0x20] sm:$0xff]  ;;  %v738_v59 = vcvt.s32.f32 %v706_v55  ;;  %v740_v60 = vcvt.s32.f32 %v708_v56 }
  0x1a   : > { %1879 = vmatpush.bf16.msra.mxu3 %v1832_v5  ;;  %615 = vmatpush.bf16.msra.mxu0 %v1832_v5  ;;  %v765_v49 = vpack.c.bf16 %v735_v46, %v733_v45  ;;  %v767_v61 = vpack.c.bf16 %v739_v58, %v737_v57  ;;  %v1063_v63 = vld [vmem:[%s2041_s27 + $0x28] sm:$0xff]  ;;  %v695_v0 = vld [vmem:[%s2115_s12 + $0x10] sm:$0xff]  ;;  %v696_v1 = vld [vmem:[%s2115_s12 + $0x18] sm:$0xff] }
  0x1b   : > { %v766_v50 = vpack.c.bf16 %v736_v48, %v734_v47  ;;  %1096 = vperm.xlu2 %1919, %v1062_v52   ;;  %v768_v62 = vpack.c.bf16 %v740_v60, %v738_v59  ;;  %v709_v2 = vunpack.c.0.s8 %v695_v0  ;;  %v711_v3 = vunpack.c.1.s8 %v695_v0  ;;  %v1072_v18 = vld [vmem:[%s2041_s27 + $0x70] sm:$0xff]  ;;  %v1859_v48 = vld [vmem:[%s2317_s6 + $0x38] sm:$0xff]  ;;  %v1857_v57 = vld [vmem:[%s2317_s6 + $0x28] sm:$0xff] }
  0x1c   : > { %1091 = vperm.xlu1 %1918, %v1061_v24   ;;  %v710_v4 = vunpack.c.0.s8 %v696_v1  ;;  %v712_v5 = vunpack.c.1.s8 %v696_v1  ;;  %v1826_v41 = vld [vmem:[%s2065_s28 + $0x30] sm:$0xff]  ;;  %v1827_v56 = vld [vmem:[%s2065_s28 + $0x38] sm:$0xff] }
  0x1d   : > { %1880 = vmatpush.bf16.msra.mxu1 %v1831_v6  ;;  %1881 = vmatpush.bf16.msra.mxu2 %v1831_v6  ;;  %v741_v7 = vcvt.s32.f32 %v709_v2  ;;  %v1858_v55 = vld [vmem:[%s2317_s6 + $0x30] sm:$0xff]  ;;  %v1855_v2 = vld [vmem:[%s2317_s6 + $0x18] sm:$0xff] }
  0x1e   : > { %1882 = vmatpush.bf16.msra.mxu3 %v1831_v6  ;;  %616 = vmatpush.bf16.msra.mxu0 %v1831_v6  ;;  %v1066_v6 = vld [vmem:[%s2041_s27 + $0x40] sm:$0xff] }
  0x20   : > { %1106 = vperm.xlu0 %1917, %v1064_v10   ;;  %v744_v10 = vcvt.s32.f32 %v712_v5 }
  0x21   : > { %1883 = vmatpush.bf16.msra.mxu1 %v1830_v8  ;;  %1884 = vmatpush.bf16.msra.mxu2 %v1830_v8 }
  0x22   : > { %1885 = vmatpush.bf16.msra.mxu3 %v1830_v8  ;;  %617 = vmatpush.bf16.msra.mxu0 %v1830_v8  ;;  %v743_v8 = vcvt.s32.f32 %v711_v3 }
  0x23   : > { %1101 = vperm.xlu2 %1919, %v1063_v63  }
  0x24   : > { %1111 = vperm.xlu1 %1918, %v1065_v32  }
  0x25   : > { %1886 = vmatpush.bf16.msra.mxu1 %v1829_v9  ;;  %1887 = vmatpush.bf16.msra.mxu2 %v1829_v9 }
  0x26   : > { %1888 = vmatpush.bf16.msra.mxu3 %v1829_v9  ;;  %618 = vmatpush.bf16.msra.mxu0 %v1829_v9  ;;  %v742_v9 = vcvt.s32.f32 %v710_v4 }
  0x28   : > { %1121 = vperm.xlu0 %1917, %v1067_v19  }
  0x29   : > { %1889 = vmatpush.bf16.msra.mxu1 %v1828_v11  ;;  %1890 = vmatpush.bf16.msra.mxu2 %v1828_v11 }
  0x2a   : > { %1891 = vmatpush.bf16.msra.mxu3 %v1828_v11  ;;  %619 = vmatpush.bf16.msra.mxu0 %v1828_v11  ;;  %v769_v11 = vpack.c.bf16 %v743_v8, %v741_v7 }
  0x2b   : > { %1116 = vperm.xlu2 %1919, %v1066_v6  }
  0x2c   : > { %630 = vmatmul.bf16.vlgmr.msra.gmra.mxu1 %v1822_v14  ;;  %640 = vmatmul.bf16.vlgmr.msra.gmra.mxu2 %v1824_v15  ;;  %v713_v14 = vunpack.c.2.s8 %v695_v0  ;;  %v715_v15 = vunpack.c.3.s8 %v695_v0 }
  0x2d   : > { %958 = vmatpush.bf16.msrb.mxu2 %v1851_v12  ;;  %909 = vmatpush.bf16.msrb.mxu1 %v1843_v13  ;;  %v770_v12 = vpack.c.bf16 %v744_v10, %v742_v9  ;;  %v1069_v13 = vld [vmem:[%s2041_s27 + $0x58] sm:$0xff]  ;;  %v1854_v9 = vld [vmem:[%s2317_s6 + $0x10] sm:$0xff]  ;;  %v1853_v10 = vld [vmem:[%s2317_s6 + $0x8] sm:$0xff] }
  0x2e   : > { %1126 = vperm.xlu1 %1918, %v1068_v44   ;;  %v745_v19 = vcvt.s32.f32 %v713_v14  ;;  %650 = vmatmul.bf16.vlgmr.msra.gmra.mxu3 %v1826_v41 }
  0x2f   : > { %1246 = vmatpush.bf16.msrb.mxu3 %v1859_v48 }
  0x30   : > { %1136 = vperm.xlu0 %1917, %v1070_v25   ;;  %v697_v25 = vld [vmem:[%s2115_s12 + $0x20] sm:$0xff] }
  0x31   : > { %959 = vmatpush.bf16.msrb.mxu2 %v1850_v16  ;;  %910 = vmatpush.bf16.msrb.mxu1 %v1842_v17  ;;  %v714_v16 = vunpack.c.2.s8 %v696_v1  ;;  %v716_v17 = vunpack.c.3.s8 %v696_v1  ;;  %v723_v38 = vunpack.c.3.s8 %v697_v25  ;;  %v1856_v1 = vld [vmem:[%s2317_s6 + $0x20] sm:$0xff] }
  0x33   : > { %1131 = vperm.xlu2 %1919, %v1069_v13   ;;  %1247 = vmatpush.bf16.msrb.mxu3 %v1858_v55 }
  0x35   : > { %960 = vmatpush.bf16.msrb.mxu2 %v1849_v20  ;;  %911 = vmatpush.bf16.msrb.mxu1 %v1841_v21  ;;  %v747_v20 = vcvt.s32.f32 %v715_v15  ;;  %v746_v21 = vcvt.s32.f32 %v714_v16 }
  0x36   : > { %1141 = vperm.xlu1 %1918, %v1071_v51  }
  0x37   : > { %1248 = vmatpush.bf16.msrb.mxu3 %v1857_v57 }
  0x38   : > { %1151 = vperm.xlu0 %1917, %v1073_v33  }
  0x39   : > { %961 = vmatpush.bf16.msrb.mxu2 %v1848_v22  ;;  %912 = vmatpush.bf16.msrb.mxu1 %v1840_v23  ;;  %v748_v22 = vcvt.s32.f32 %v716_v17  ;;  %v771_v23 = vpack.c.bf16 %v747_v20, %v745_v19  ;;  %v1852_v19 = vld [vmem:[%s2317_s6] sm:$0xff] }
  0x3b   : > { %1146 = vperm.xlu2 %1919, %v1072_v18   ;;  %v772_v24 = vpack.c.bf16 %v748_v22, %v746_v21  ;;  %1249 = vmatpush.bf16.msrb.mxu3 %v1856_v1 }
  0x3c   : > { %635 = vmatmul.bf16.gmra.mxu1 %v1823_v28  ;;  %645 = vmatmul.bf16.gmra.mxu2 %v1825_v29  ;;  %v719_v28 = vunpack.c.1.s8 %v697_v25 }
  0x3d   : > { %962 = vmatpush.bf16.msrb.mxu2 %v1847_v26  ;;  %913 = vmatpush.bf16.msrb.mxu1 %v1839_v27  ;;  %v698_v26 = vld [vmem:[%s2115_s12 + $0x28] sm:$0xff]  ;;  %v717_v27 = vunpack.c.0.s8 %v697_v25 }
  0x3e   : > { %v718_v29 = vunpack.c.0.s8 %v698_v26  ;;  %v751_v32 = vcvt.s32.f32 %v719_v28  ;;  %v722_v39 = vunpack.c.2.s8 %v698_v26  ;;  %v724_v40 = vunpack.c.3.s8 %v698_v26  ;;  %655 = vmatmul.bf16.gmra.mxu3 %v1827_v56 }
  0x3f   : > { %1250 = vmatpush.bf16.msrb.mxu3 %v1855_v2 }
  0x40   : > { %v750_v33 = vcvt.s32.f32 %v718_v29  ;;  %v754_v44 = vcvt.s32.f32 %v722_v39  ;;  %v756_v45 = vcvt.s32.f32 %v724_v40 }
  0x41   : > { %963 = vmatpush.bf16.msrb.mxu2 %v1846_v30  ;;  %914 = vmatpush.bf16.msrb.mxu1 %v1838_v31  ;;  %v720_v30 = vunpack.c.1.s8 %v698_v26  ;;  %v749_v31 = vcvt.s32.f32 %v717_v27 }
  0x42   : > { %v776_v47 = vpack.c.bf16 %v756_v45, %v754_v44 }
  0x43   : > { %v752_v34 = vcvt.s32.f32 %v720_v30  ;;  %v773_v35 = vpack.c.bf16 %v751_v32, %v749_v31  ;;  %1251 = vmatpush.bf16.msrb.mxu3 %v1854_v9 }
  0x45   : > { %964 = vmatpush.bf16.msrb.mxu2 %v1845_v36  ;;  %915 = vmatpush.bf16.msrb.mxu1 %v1837_v37  ;;  %v774_v36 = vpack.c.bf16 %v752_v34, %v750_v33  ;;  %v721_v37 = vunpack.c.2.s8 %v697_v25 }
  0x47   : > { %1252 = vmatpush.bf16.msrb.mxu3 %v1853_v10 }
  0x49   : > { %965 = vmatpush.bf16.msrb.mxu2 %v1844_v42  ;;  %916 = vmatpush.bf16.msrb.mxu1 %v1836_v43  ;;  %v753_v42 = vcvt.s32.f32 %v721_v37  ;;  %v755_v43 = vcvt.s32.f32 %v723_v38 }
  0x4b   : > { %v775_v46 = vpack.c.bf16 %v755_v43, %v753_v42  ;;  %1253 = vmatpush.bf16.msrb.mxu3 %v1852_v19 }
  0x4c   : > { %917 = vmatmul.bf16.vlgmr.msrb.gmra.mxu1 %v765_v49  ;;  %966 = vmatmul.bf16.vlgmr.msrb.gmra.mxu2 %v766_v50  ;;  %v699_v49 = vld [vmem:[%s2115_s12 + $0x30] sm:$0xff]  ;;  %v700_v50 = vld [vmem:[%s2115_s12 + $0x38] sm:$0xff] }
  0x4d   : > { %v725_v51 = vunpack.c.0.s8 %v699_v49  ;;  %v727_v52 = vunpack.c.1.s8 %v699_v49  ;;  %v726_v53 = vunpack.c.0.s8 %v700_v50  ;;  %v728_v54 = vunpack.c.1.s8 %v700_v50 }
  0x4e   : > { %v729_v4 = vunpack.c.2.s8 %v699_v49  ;;  %v731_v5 = vunpack.c.3.s8 %v699_v49  ;;  %v730_v6 = vunpack.c.2.s8 %v700_v50  ;;  %v732_v7 = vunpack.c.3.s8 %v700_v50 }
  0x4f   : > { %v757_v58 = vcvt.s32.f32 %v725_v51  ;;  %v759_v59 = vcvt.s32.f32 %v727_v52  ;;  %v758_v60 = vcvt.s32.f32 %v726_v53 }
  0x50   : > { %v762_v13 = vcvt.s32.f32 %v730_v6  ;;  %v764_v14 = vcvt.s32.f32 %v732_v7 }
  0x52   : > { %v780_v17 = vpack.c.bf16 %v764_v14, %v762_v13 }
  0x5c   : > { %922 = vmatmul.bf16.gmra.mxu1 %v767_v61  ;;  %971 = vmatmul.bf16.gmra.mxu2 %v768_v62  ;;  %v760_v61 = vcvt.s32.f32 %v728_v54  ;;  %v777_v62 = vpack.c.bf16 %v759_v59, %v757_v58 }
  0x5e   : > { %v778_v63 = vpack.c.bf16 %v760_v61, %v758_v60 }
  0x6c   : > { %927 = vmatmul.bf16.gmra.mxu1 %v769_v11  ;;  %976 = vmatmul.bf16.gmra.mxu2 %v770_v12  ;;  %v761_v11 = vcvt.s32.f32 %v729_v4  ;;  %v763_v12 = vcvt.s32.f32 %v731_v5 }
  0x6e   : > { %v779_v16 = vpack.c.bf16 %v763_v12, %v761_v11 }
  0x7c   : > { %932 = vmatmul.bf16.gmra.mxu1 %v771_v23  ;;  %981 = vmatmul.bf16.gmra.mxu2 %v772_v24 }
  0x82   : > { %v1077_v24 = vpop.permute.xlu0 %1076 }
  0x8a   : > { %v1082_v30 = vpop.permute.xlu0 %1081 }
  0x8c   : > { %937 = vmatmul.bf16.gmra.mxu1 %v773_v35  ;;  %986 = vmatmul.bf16.gmra.mxu2 %v774_v36  ;;  %v1087_v35 = vpop.permute.xlu1 %1086 }
  0x92   : > { %v1107_v61 = vpop.permute.xlu0 %1106 }
  0x94   : > { %v1092_v41 = vpop.permute.xlu1 %1091 }
  0x9a   : > { %v1122_v11 = vpop.permute.xlu0 %1121 }
  0x9c   : > { %942 = vmatmul.bf16.gmra.mxu1 %v775_v46  ;;  %991 = vmatmul.bf16.gmra.mxu2 %v776_v47  ;;  %v1097_v46 = vpop.permute.xlu2 %1096 }
  0xa4   : > { %v1102_v52 = vpop.permute.xlu2 %1101 }
  0xa9   : > { %v2157_v0 = vpop.f32.mrf.mxu1 }
  0xac   : > { %947 = vmatmul.bf16.gmra.mxu1 %v777_v62  ;;  %996 = vmatmul.bf16.gmra.mxu2 %v778_v63  ;;  %v1112_v63 = vpop.permute.xlu1 %1111  ;;  %v1117_v13 = vpop.permute.xlu2 %1116 }
  0xaf   : > { %v2165_v3 = vpop.f32.mrf.mxu2 }
  0xb1   : > { %v2167_v8 = vpop.f32.mrf.mxu1 }
  0xb7   : > { %v2175_v15 = vpop.f32.mrf.mxu2 }
  0xb9   : > { %v2177_v18 = vpop.f32.mrf.mxu1 }
  0xbc   : > { %952 = vmatmul.bf16.gmra.mxu1 %v779_v16  ;;  %1001 = vmatmul.bf16.gmra.mxu2 %v780_v17 }
  0xbf   : > { %v2182_v20 = vpop.f32.mrf.mxu2 }
  0xc1   : > { %v2184_v21 = vpop.f32.mrf.mxu1 }
  0xc7   : > { %v2186_v22 = vpop.f32.mrf.mxu2 }
  0xc9   : > { %v918_v23 = vpop.f32.mrf.mxu1 }
  0xcf   : > { %v967_v25 = vpop.f32.mrf.mxu2 }
  0xd0   : > { %v968_v27 = vadd.f32 %v967_v25, %v918_v23 }
  0xd1   : > { %v920_v26 = vpop.f32.mrf.mxu1 }
  0xd2   : > { %v1154_v32 = vmul.f32 %v1077_v24, %v968_v27 }
  0xd7   : > { %v969_v28 = vpop.f32.mrf.mxu2 }
  0xd8   : > { %v970_v29 = vadd.f32 %v969_v28, %v920_v26  ;;  %v1820_v26 = vld [vmem:[%s2065_s28] sm:$0xff]  ;;  %v1127_v28 = vpop.permute.xlu1 %1126 }
  0xd9   : > { %v923_v31 = vpop.f32.mrf.mxu1  ;;  %620 = vmatmul.bf16.vlgmr.msra.gmra.mxu0 %v1820_v26 }
  0xda   : > { %v1155_v33 = vmul.f32 %v1082_v30, %v970_v29  ;;  %v1132_v30 = vpop.permute.xlu2 %1131 }
  0xdc   : > { %v1170_v34 = vpack.c.bf16 %v1155_v33, %v1154_v32 }
  0xde   : > { %1254 = vmatmul.bf16.vlgmr.msrb.gmra.mxu3 %v1170_v34 }
  0xdf   : > { %v972_v36 = vpop.f32.mrf.mxu2 }
  0xe0   : > { %v973_v38 = vadd.f32 %v972_v36, %v923_v31 }
  0xe1   : > { %v925_v37 = vpop.f32.mrf.mxu1 }
  0xe2   : > { %v1156_v43 = vmul.f32 %v1087_v35, %v973_v38  ;;  %v1867_v35 = vld [vmem:[%s2319_s8 + $0x38] sm:$0xff] }
  0xe3   : > { %1387 = vmatpush.bf16.msrb.mxu0 %v1867_v35 }
  0xe7   : > { %v974_v39 = vpop.f32.mrf.mxu2 }
  0xe8   : > { %v975_v40 = vadd.f32 %v974_v39, %v925_v37  ;;  %v1866_v37 = vld [vmem:[%s2319_s8 + $0x30] sm:$0xff]  ;;  %v1821_v39 = vld [vmem:[%s2065_s28 + $0x8] sm:$0xff] }
  0xe9   : > { %v928_v42 = vpop.f32.mrf.mxu1  ;;  %1388 = vmatpush.bf16.msrb.mxu0 %v1866_v37 }
  0xea   : > { %v1157_v44 = vmul.f32 %v1092_v41, %v975_v40  ;;  %v1865_v40 = vld [vmem:[%s2319_s8 + $0x28] sm:$0xff]  ;;  %625 = vmatmul.bf16.gmra.mxu0 %v1821_v39 }
  0xec   : > { %v1171_v45 = vpack.c.bf16 %v1157_v44, %v1156_v43  ;;  %v1137_v44 = vpop.permute.xlu0 %1136 }
  0xed   : > { %1389 = vmatpush.bf16.msrb.mxu0 %v1865_v40 }
  0xee   : > { %1259 = vmatmul.bf16.gmra.mxu3 %v1171_v45  ;;  %v1142_v45 = vpop.permute.xlu1 %1141 }
  0xef   : > { %v977_v47 = vpop.f32.mrf.mxu2 }
  0xf0   : > { %v978_v49 = vadd.f32 %v977_v47, %v928_v42 }
  0xf1   : > { %v930_v48 = vpop.f32.mrf.mxu1 }
  0xf2   : > { %v1158_v54 = vmul.f32 %v1097_v46, %v978_v49  ;;  %v1864_v46 = vld [vmem:[%s2319_s8 + $0x20] sm:$0xff]  ;;  %v2202_v49 = vpop.f32.mrf.mxu3 }
  0xf3   : > { %1390 = vmatpush.bf16.msrb.mxu0 %v1864_v46 }
  0xf7   : > { %v979_v50 = vpop.f32.mrf.mxu2 }
  0xf8   : > { %v980_v51 = vadd.f32 %v979_v50, %v930_v48 }
  0xf9   : > { %v933_v53 = vpop.f32.mrf.mxu1 }
  0xfa   : > { %v1159_v55 = vmul.f32 %v1102_v52, %v980_v51  ;;  %v1863_v52 = vld [vmem:[%s2319_s8 + $0x18] sm:$0xff] }
  0xfb   : > { %1391 = vmatpush.bf16.msrb.mxu0 %v1863_v52 }
  0xfc   : > { %v1172_v56 = vpack.c.bf16 %v1159_v55, %v1158_v54  ;;  %v1862_v54 = vld [vmem:[%s2319_s8 + $0x10] sm:$0xff]  ;;  %v2210_v55 = vpop.f32.mrf.mxu3 }
  0xfe   : > { %1264 = vmatmul.bf16.gmra.mxu3 %v1172_v56  ;;  %v1861_v56 = vld [vmem:[%s2319_s8 + $0x8] sm:$0xff] }
  0xff   : > { %v982_v57 = vpop.f32.mrf.mxu2  ;;  %1392 = vmatpush.bf16.msrb.mxu0 %v1862_v54 }
 0x100   : > { %v983_v59 = vadd.f32 %v982_v57, %v933_v53 }
 0x101   : > { %v935_v58 = vpop.f32.mrf.mxu1 }
 0x102   : > { %v1160_v2 = vmul.f32 %v1107_v61, %v983_v59  ;;  %v1152_v61 = vpop.permute.xlu0 %1151 }
 0x103   : > { %1393 = vmatpush.bf16.msrb.mxu0 %v1861_v56 }
 0x107   : > { %v984_v60 = vpop.f32.mrf.mxu2 }
 0x108   : > { %v985_v62 = vadd.f32 %v984_v60, %v935_v58 }
 0x109   : > { %v938_v1 = vpop.f32.mrf.mxu1 }
 0x10a   : > { %v1161_v4 = vmul.f32 %v1112_v63, %v985_v62  ;;  %v1147_v62 = vpop.permute.xlu2 %1146 }
 0x10c   : > { %v1173_v5 = vpack.c.bf16 %v1161_v4, %v1160_v2  ;;  %v1860_v2 = vld [vmem:[%s2319_s8] sm:$0xff] }
 0x10d   : > { %1394 = vmatpush.bf16.msrb.mxu0 %v1860_v2 }
 0x10e   : > { %1269 = vmatmul.bf16.gmra.mxu3 %v1173_v5  ;;  %v2218_v5 = vpop.f32.mrf.mxu3 }
 0x10f   : > { %v987_v6 = vpop.f32.mrf.mxu2 }
 0x110   : > { %v988_v9 = vadd.f32 %v987_v6, %v938_v1 }
 0x111   : > { %v940_v7 = vpop.f32.mrf.mxu1 }
 0x112   : > { %v1162_v16 = vmul.f32 %v1117_v13, %v988_v9  ;;  %v1921_v9 = vld [vmem:[%s2318_s7] ss:$0 sm:$0xff] }
 0x116   : > { %v2220_v6 = vpop.f32.mrf.mxu3 }
 0x117   : > { %v989_v10 = vpop.f32.mrf.mxu2 }
 0x118   : > { %v990_v12 = vadd.f32 %v989_v10, %v940_v7 }
 0x119   : > { %v943_v14 = vpop.f32.mrf.mxu1 }
 0x11a   : > { %v1163_v17 = vmul.f32 %v1122_v11, %v990_v12 }
 0x11c   : > { %v1174_v19 = vpack.c.bf16 %v1163_v17, %v1162_v16 }
 0x11e   : > { %1274 = vmatmul.bf16.gmra.mxu3 %v1174_v19 }
 0x11f   : > { %v992_v23 = vpop.f32.mrf.mxu2 }
 0x120   : > { %v993_v25 = vadd.f32 %v992_v23, %v943_v14 }
 0x121   : > { %v945_v24 = vpop.f32.mrf.mxu1 }
 0x122   : > { %v1164_v32 = vmul.f32 %v1127_v28, %v993_v25 }
 0x127   : > { %v994_v27 = vpop.f32.mrf.mxu2 }
 0x128   : > { %v995_v29 = vadd.f32 %v994_v27, %v945_v24 }
 0x129   : > { %v948_v31 = vpop.f32.mrf.mxu1 }
 0x12a   : > { %v1165_v33 = vmul.f32 %v1132_v30, %v995_v29 }
 0x12c   : > { %v1175_v34 = vpack.c.bf16 %v1165_v33, %v1164_v32 }
 0x12e   : > { %1279 = vmatmul.bf16.gmra.mxu3 %v1175_v34 }
 0x12f   : > { %v997_v36 = vpop.f32.mrf.mxu2 }
 0x130   : > { %v998_v41 = vadd.f32 %v997_v36, %v948_v31 }
 0x131   : > { %v950_v38 = vpop.f32.mrf.mxu1 }
 0x132   : > { %v1166_v47 = vmul.f32 %v1137_v44, %v998_v41 }
 0x137   : > { %v999_v42 = vpop.f32.mrf.mxu2 }
 0x138   : > { %v1000_v43 = vadd.f32 %v999_v42, %v950_v38 }
 0x139   : > { %v953_v51 = vpop.f32.mrf.mxu1 }
 0x13a   : > { %v1167_v48 = vmul.f32 %v1142_v45, %v1000_v43 }
 0x13c   : > { %v1176_v50 = vpack.c.bf16 %v1167_v48, %v1166_v47 }
 0x13e   : > { %1284 = vmatmul.bf16.gmra.mxu3 %v1176_v50 }
 0x13f   : > { %v1002_v53 = vpop.f32.mrf.mxu2 }
 0x140   : > { %v1003_v57 = vadd.f32 %v1002_v53, %v953_v51 }
 0x141   : > { %v955_v58 = vpop.f32.mrf.mxu1 }
 0x142   : > { %v1168_v63 = vmul.f32 %v1147_v62, %v1003_v57 }
 0x147   : > { %v1004_v59 = vpop.f32.mrf.mxu2 }
 0x148   : > { %v1005_v60 = vadd.f32 %v1004_v59, %v955_v58 }
 0x14a   : > { %v1169_v1 = vmul.f32 %v1152_v61, %v1005_v60 }
 0x14c   : > { %v1177_v4 = vpack.c.bf16 %v1169_v1, %v1168_v63 }
 0x14e   : > { %1289 = vmatmul.bf16.gmra.mxu3 %v1177_v4 }
 0x156   : > { %v621_v59 = vpop.f32.mrf.mxu0 }
 0x15e   : > { %v623_v4 = vpop.f32.mrf.mxu0 }
 0x161   : > { %v1255_v7 = vpop.f32.mrf.mxu3 }
 0x162   : > { %v1256_v10 = vadd.f32 %v1921_v9, %v1255_v7 }
 0x164   : > { %v1295_v13 = vmax.f32 %v1256_v10, 0.0 }
 0x169   : > { %v1257_v11 = vpop.f32.mrf.mxu3 }
 0x16a   : > { %v1258_v12 = vadd.f32 %v1921_v9, %v1257_v11 }
 0x16c   : > { %v1296_v14 = vmax.f32 %v1258_v12, 0.0 }
 0x16e   : > { %v1311_v16 = vpack.c.bf16 %v1296_v14, %v1295_v13  ;;  %v626_v13 = vpop.f32.mrf.mxu0 }
 0x170   : > { %1395 = vmatmul.bf16.vlgmr.msrb.gmra.mxu0 %v1311_v16 }
 0x171   : > { %v1260_v17 = vpop.f32.mrf.mxu3 }
 0x172   : > { %v1261_v19 = vadd.f32 %v1921_v9, %v1260_v17 }
 0x174   : > { %v1297_v25 = vmax.f32 %v1261_v19, 0.0 }
 0x176   : > { %v628_v19 = vpop.f32.mrf.mxu0 }
 0x179   : > { %v1262_v23 = vpop.f32.mrf.mxu3 }
 0x17a   : > { %v1263_v24 = vadd.f32 %v1921_v9, %v1262_v23  ;;  %v2228_v23 = vld [vmem:[%s2320_s9] ss:$0 sm:$0xff] }
 0x17c   : > { %v1298_v26 = vmax.f32 %v1263_v24, 0.0  ;;  %v2233_v24 = vld [vmem:[%s2316_s5] ss:$0 sm:$0xff] }
 0x17e   : > { %v1312_v27 = vpack.c.bf16 %v1298_v26, %v1297_v25  ;;  %v622_v26 = vadd.f32 %v2233_v24, %v621_v59 }
 0x180   : > { %1400 = vmatmul.bf16.gmra.mxu0 %v1312_v27 }
 0x181   : > { %v1265_v28 = vpop.f32.mrf.mxu3 }
 0x182   : > { %v1266_v29 = vadd.f32 %v1921_v9, %v1265_v28 }
 0x184   : > { %v1299_v32 = vmax.f32 %v1266_v29, 0.0 }
 0x189   : > { %v1267_v30 = vpop.f32.mrf.mxu3 }
 0x18a   : > { %v1268_v31 = vadd.f32 %v1921_v9, %v1267_v30  ;;  %v624_v30 = vadd.f32 %v2233_v24, %v623_v4 }
 0x18c   : > { %v1300_v33 = vmax.f32 %v1268_v31, 0.0 }
 0x18e   : > { %v1313_v34 = vpack.c.bf16 %v1300_v33, %v1299_v32 }
 0x190   : > { %1405 = vmatmul.bf16.gmra.mxu0 %v1313_v34 }
 0x191   : > { %v1270_v35 = vpop.f32.mrf.mxu3 }
 0x192   : > { %v1271_v36 = vadd.f32 %v1921_v9, %v1270_v35  ;;  %v627_v35 = vadd.f32 %v2233_v24, %v626_v13 }
 0x194   : > { %v1301_v39 = vmax.f32 %v1271_v36, 0.0 }
 0x199   : > { %v1272_v37 = vpop.f32.mrf.mxu3 }
 0x19a   : > { %v1273_v38 = vadd.f32 %v1921_v9, %v1272_v37 }
 0x19c   : > { %v1302_v40 = vmax.f32 %v1273_v38, 0.0 }
 0x19e   : > { %v1314_v41 = vpack.c.bf16 %v1302_v40, %v1301_v39  ;;  %v629_v40 = vadd.f32 %v2233_v24, %v628_v19 }
 0x1a0   : > { %1410 = vmatmul.bf16.gmra.mxu0 %v1314_v41 }
 0x1a1   : > { %v1275_v42 = vpop.f32.mrf.mxu3 }
 0x1a2   : > { %v1276_v43 = vadd.f32 %v1921_v9, %v1275_v42 }
 0x1a4   : > { %v1303_v46 = vmax.f32 %v1276_v43, 0.0 }
 0x1a9   : > { %v1277_v44 = vpop.f32.mrf.mxu3 }
 0x1aa   : > { %v1278_v45 = vadd.f32 %v1921_v9, %v1277_v44 }
 0x1ac   : > { %v1304_v47 = vmax.f32 %v1278_v45, 0.0  ;;  %v632_v45 = vadd.f32 %v2233_v24, %v2157_v0  ;;  %v637_v0 = vadd.f32 %v2233_v24, %v2177_v18  ;;  %v642_v18 = vadd.f32 %v2233_v24, %v2165_v3 }
 0x1ad   : > { %v647_v3 = vadd.f32 %v2233_v24, %v2182_v20  ;;  %v652_v20 = vadd.f32 %v2233_v24, %v2202_v49  ;;  %v657_v49 = vadd.f32 %v2233_v24, %v2218_v5 }
 0x1ae   : > { %v1315_v48 = vpack.c.bf16 %v1304_v47, %v1303_v46 }
 0x1b0   : > { %1415 = vmatmul.bf16.gmra.mxu0 %v1315_v48 }
 0x1b1   : > { %v1280_v50 = vpop.f32.mrf.mxu3 }
 0x1b2   : > { %v1281_v51 = vadd.f32 %v1921_v9, %v1280_v50 }
 0x1b4   : > { %v1305_v54 = vmax.f32 %v1281_v51, 0.0  ;;  %v634_v51 = vadd.f32 %v2233_v24, %v2167_v8  ;;  %v639_v8 = vadd.f32 %v2233_v24, %v2184_v21  ;;  %v644_v21 = vadd.f32 %v2233_v24, %v2175_v15 }
 0x1b5   : > { %v649_v15 = vadd.f32 %v2233_v24, %v2186_v22  ;;  %v654_v22 = vadd.f32 %v2233_v24, %v2210_v55 }
 0x1b9   : > { %v1282_v52 = vpop.f32.mrf.mxu3 }
 0x1ba   : > { %v1283_v53 = vadd.f32 %v1921_v9, %v1282_v52 }
 0x1bc   : > { %v1306_v56 = vmax.f32 %v1283_v53, 0.0 }
 0x1be   : > { %v1316_v57 = vpack.c.bf16 %v1306_v56, %v1305_v54 }
 0x1c0   : > { %1420 = vmatmul.bf16.gmra.mxu0 %v1316_v57 }
 0x1c1   : > { %v1285_v58 = vpop.f32.mrf.mxu3 }
 0x1c2   : > { %v1286_v60 = vadd.f32 %v1921_v9, %v1285_v58 }
 0x1c4   : > { %v1307_v63 = vmax.f32 %v1286_v60, 0.0 }
 0x1c9   : > { %v1287_v61 = vpop.f32.mrf.mxu3 }
 0x1ca   : > { %v1288_v62 = vadd.f32 %v1921_v9, %v1287_v61 }
 0x1cc   : > { %v1308_v1 = vmax.f32 %v1288_v62, 0.0 }
 0x1ce   : > { %v1317_v2 = vpack.c.bf16 %v1308_v1, %v1307_v63 }
 0x1d0   : > { %1425 = vmatmul.bf16.gmra.mxu0 %v1317_v2 }
 0x1d1   : > { %v1290_v7 = vpop.f32.mrf.mxu3 }
 0x1d2   : > { %v1291_v10 = vadd.f32 %v1921_v9, %v1290_v7 }
 0x1d4   : > { %v1309_v14 = vmax.f32 %v1291_v10, 0.0 }
 0x1d9   : > { %v1292_v11 = vpop.f32.mrf.mxu3 }
 0x1da   : > { %v1293_v12 = vadd.f32 %v1921_v9, %v1292_v11 }
 0x1dc   : > { %v1310_v16 = vmax.f32 %v1293_v12, 0.0 }
 0x1de   : > { %v1318_v17 = vpack.c.bf16 %v1310_v16, %v1309_v14 }
 0x1e0   : > { %1430 = vmatmul.bf16.gmra.mxu0 %v1318_v17 }
 0x1ed   : > { %v1396_v25 = vpop.f32.mrf.mxu0 }
 0x1ee   : > { %v1397_v9 = vadd.f32 %v2228_v23, %v1396_v25 }
 0x1f0   : > { %v1452_v27 = vadd.f32 %v1397_v9, %v622_v26 }
 0x1f2   : > { %v1468_v28 = vmax.f32 %v1452_v27, 0.0 }
 0x1f4   : > { %1484 = vst [vmem:[%s2242_s21] sm:$0xff] %v1468_v28 }
 0x1f5   : > { %v1398_v29 = vpop.f32.mrf.mxu0 }
 0x1f6   : > { %v1399_v31 = vadd.f32 %v2228_v23, %v1398_v29 }
 0x1f8   : > { %v1453_v32 = vadd.f32 %v1399_v31, %v624_v30 }
 0x1fa   : > { %v1469_v33 = vmax.f32 %v1453_v32, 0.0 }
 0x1fc   : > { %1485 = vst [vmem:[%s2242_s21 + $0x8] sm:$0xff] %v1469_v33 }
 0x1fd   : > { %v1401_v34 = vpop.f32.mrf.mxu0 }
 0x1fe   : > { %v1402_v36 = vadd.f32 %v2228_v23, %v1401_v34 }
 0x200   : > { %v1454_v37 = vadd.f32 %v1402_v36, %v627_v35 }
 0x202   : > { %v1470_v38 = vmax.f32 %v1454_v37, 0.0 }
 0x204   : > { %1486 = vst [vmem:[%s2242_s21 + $0x10] sm:$0xff] %v1470_v38 }
 0x205   : > { %v1403_v39 = vpop.f32.mrf.mxu0 }
 0x206   : > { %v1404_v41 = vadd.f32 %v2228_v23, %v1403_v39 }
 0x208   : > { %v1455_v42 = vadd.f32 %v1404_v41, %v629_v40  ;;  %v659_v41 = vadd.f32 %v2233_v24, %v2220_v6 }
 0x20a   : > { %v1471_v43 = vmax.f32 %v1455_v42, 0.0 }
 0x20c   : > { %1487 = vst [vmem:[%s2242_s21 + $0x18] sm:$0xff] %v1471_v43 }
 0x20d   : > { %v1406_v44 = vpop.f32.mrf.mxu0 }
 0x20e   : > { %v1407_v46 = vadd.f32 %v2228_v23, %v1406_v44 }
 0x210   : > { %v1456_v47 = vadd.f32 %v1407_v46, %v632_v45 }
 0x212   : > { %v1472_v48 = vmax.f32 %v1456_v47, 0.0 }
 0x214   : > { %1488 = vst [vmem:[%s2242_s21 + $0x20] sm:$0xff] %v1472_v48 }
 0x215   : > { %v1408_v50 = vpop.f32.mrf.mxu0 }
 0x216   : > { %v1409_v52 = vadd.f32 %v2228_v23, %v1408_v50 }
 0x218   : > { %v1457_v53 = vadd.f32 %v1409_v52, %v634_v51 }
 0x21a   : > { %v1473_v54 = vmax.f32 %v1457_v53, 0.0 }
 0x21c   : > { %1489 = vst [vmem:[%s2242_s21 + $0x28] sm:$0xff] %v1473_v54 }
 0x21d   : > { %v1411_v56 = vpop.f32.mrf.mxu0 }
 0x21e   : > { %v1412_v57 = vadd.f32 %v2228_v23, %v1411_v56 }
 0x220   : > { %v1458_v58 = vadd.f32 %v1412_v57, %v637_v0 }
 0x222   : > { %v1474_v59 = vmax.f32 %v1458_v58, 0.0 }
 0x224   : > { %1490 = vst [vmem:[%s2242_s21 + $0x30] sm:$0xff] %v1474_v59 }
 0x225   : > { %v1413_v60 = vpop.f32.mrf.mxu0 }
 0x226   : > { %v1414_v61 = vadd.f32 %v2228_v23, %v1413_v60 }
 0x228   : > { %v1459_v62 = vadd.f32 %v1414_v61, %v639_v8 }
 0x22a   : > { %v1475_v63 = vmax.f32 %v1459_v62, 0.0 }
 0x22c   : > { %1491 = vst [vmem:[%s2242_s21 + $0x38] sm:$0xff] %v1475_v63 }
 0x22d   : > { %v1416_v1 = vpop.f32.mrf.mxu0 }
 0x22e   : > { %v1417_v2 = vadd.f32 %v2228_v23, %v1416_v1 }
 0x230   : > { %v1460_v4 = vadd.f32 %v1417_v2, %v642_v18 }
 0x232   : > { %v1476_v7 = vmax.f32 %v1460_v4, 0.0 }
 0x234   : > { %1492 = vst [vmem:[%s2242_s21 + $0x40] sm:$0xff] %v1476_v7 }
 0x235   : > { %v1418_v10 = vpop.f32.mrf.mxu0 }
 0x236   : > { %v1419_v11 = vadd.f32 %v2228_v23, %v1418_v10 }
 0x238   : > { %v1461_v12 = vadd.f32 %v1419_v11, %v644_v21 }
 0x23a   : > { %v1477_v13 = vmax.f32 %v1461_v12, 0.0 }
 0x23c   : > { %1493 = vst [vmem:[%s2242_s21 + $0x48] sm:$0xff] %v1477_v13 }
 0x23d   : > { %v1421_v14 = vpop.f32.mrf.mxu0 }
 0x23e   : > { %v1422_v16 = vadd.f32 %v2228_v23, %v1421_v14 }
 0x240   : > { %v1462_v17 = vadd.f32 %v1422_v16, %v647_v3 }
 0x242   : > { %v1478_v19 = vmax.f32 %v1462_v17, 0.0 }
 0x244   : > { %1494 = vst [vmem:[%s2242_s21 + $0x50] sm:$0xff] %v1478_v19 }
 0x245   : > { %v1423_v25 = vpop.f32.mrf.mxu0 }
 0x246   : > { %v1424_v26 = vadd.f32 %v2228_v23, %v1423_v25 }
 0x248   : > { %v1463_v9 = vadd.f32 %v1424_v26, %v649_v15 }
 0x24a   : > { %v1479_v27 = vmax.f32 %v1463_v9, 0.0 }
 0x24c   : > { %1495 = vst [vmem:[%s2242_s21 + $0x58] sm:$0xff] %v1479_v27 }
 0x24d   : > { %v1426_v28 = vpop.f32.mrf.mxu0 }
 0x24e   : > { %v1427_v29 = vadd.f32 %v2228_v23, %v1426_v28 }
 0x250   : > { %v1464_v30 = vadd.f32 %v1427_v29, %v652_v20 }
 0x252   : > { %v1480_v31 = vmax.f32 %v1464_v30, 0.0 }
 0x254   : > { %1496 = vst [vmem:[%s2242_s21 + $0x60] sm:$0xff] %v1480_v31 }
 0x255   : > { %v1428_v32 = vpop.f32.mrf.mxu0 }
 0x256   : > { %v1429_v33 = vadd.f32 %v2228_v23, %v1428_v32 }
 0x258   : > { %v1465_v34 = vadd.f32 %v1429_v33, %v654_v22 }
 0x25a   : > { %v1481_v35 = vmax.f32 %v1465_v34, 0.0 }
 0x25c   : > { %1497 = vst [vmem:[%s2242_s21 + $0x68] sm:$0xff] %v1481_v35 }
 0x25d   : > { %v1431_v36 = vpop.f32.mrf.mxu0 }
 0x25e   : > { %v1432_v37 = vadd.f32 %v2228_v23, %v1431_v36 }
 0x260   : > { %v1466_v38 = vadd.f32 %v1432_v37, %v657_v49 }
 0x262   : > { %v1482_v39 = vmax.f32 %v1466_v38, 0.0 }
 0x264   : > { %1498 = vst [vmem:[%s2242_s21 + $0x70] sm:$0xff] %v1482_v39 }
 0x265   : > { %v1433_v40 = vpop.f32.mrf.mxu0 }
 0x266   : > { %v1434_v55 = vadd.f32 %v2228_v23, %v1433_v40 }
 0x268   : > { %v1467_v42 = vadd.f32 %v1434_v55, %v659_v41 }
 0x26a   : > { %v1483_v43 = vmax.f32 %v1467_v42, 0.0 }
 0x26c   : > { %1499 = vst [vmem:[%s2242_s21 + $0x78] sm:$0xff] %v1483_v43 }
 0x26d PF: > { %s20_s15 = sadd.s32 1, %s1945_s15   ;;  %s2322_s13 = smov %s1941_s14 }
 0x26e   : > { %p17_p6 = scmp.ge.s32.totalorder %s20_s15, 4   ;;  %s2323_s14 = smov %s2325_s16 }
 0x270   :  { %19 = sbr.rel (!%p17_p6) target bundleno = 2 (0x2), region = 107 }

</bundles_post_ra>
